<compile_context>
chip_gen: v7x
topology: tpu7x:2x2x1
jax: 0.10.0
libtpu: 0.0.40
codegen_flags: <defaults>
</compile_context>

<pallas_src>
import jax
import jax.numpy as jnp
from jax.experimental import pallas as pl
from jax.experimental.pallas import tpu as pltpu


def valuenet_kernel(x_ref, w1_ref, b1_ref, w2t_ref, b2_ref, w3_ref, b3_ref, o_ref):
    # Layer 1: (TB,1024) @ (1024,256) + (1,256), ReLU          -- MXU
    h1 = jnp.dot(x_ref[...], w1_ref[...], preferred_element_type=jnp.float32)
    h1 = jnp.maximum(h1 + b1_ref[...], 0.0)                     # (TB, 256)

    # Transpose once so the batch lands on the lane axis downstream.
    h1_t = h1.T                                                 # (256, TB)

    # Layer 2 (transposed): (16,256) @ (256,TB) + (16,1), ReLU  -- MXU
    h2_t = jnp.dot(w2t_ref[...], h1_t, preferred_element_type=jnp.float32)
    h2_t = jnp.maximum(h2_t + b2_ref[...], 0.0)                 # (16, TB)

    # Layer 3: 16 -> 1 contraction as VPU multiply + sublane reduce (no MXU).
    out_row = jnp.sum(h2_t * w3_ref[...], axis=0, keepdims=True) + b3_ref[...]
    o_ref[...] = out_row.astype(o_ref.dtype)                    # (1, TB) lane-dense


def _round_up(n, m):
    return ((n + m - 1) // m) * m


def value_net_forward(x, params, *, block_b=512):
    """x: (B, 4, 16, 16) or (B, 1024) float32.  Returns (B, 1) float32."""
    x = x.reshape(x.shape[0], -1).astype(jnp.float32)
    B, IN = x.shape
    w1, b1, w2, b2, w3, b3 = (params[k] for k in ("w1", "b1", "w2", "b2", "w3", "b3"))
    H1 = w1.shape[1]          # 256
    H2 = w2.shape[0]          # 16
    assert IN == w1.shape[0]

    # Batch tile: multiple of 256, no larger than needed for tiny batches.
    TB = min(block_b, _round_up(max(B, 1), 256))
    B_pad = _round_up(B, TB)
    if B_pad != B:
        x = jnp.pad(x, ((0, B_pad - B), (0, 0)))
    G = B_pad // TB

    out = pl.pallas_call(
        valuenet_kernel,
        out_shape=jax.ShapeDtypeStruct((1, B_pad), jnp.float32),
        grid=(G,),
        in_specs=[
            # x: streamed per batch tile (double-buffered by the pipeline).
            pl.BlockSpec((TB, IN), lambda i: (i, 0)),
            # weights / biases: constant block index -> VMEM-resident, fetched once.
            pl.BlockSpec((IN, H1), lambda i: (0, 0)),   # w1 (1024, 256)
            pl.BlockSpec((1, H1), lambda i: (0, 0)),    # b1 (1, 256)
            pl.BlockSpec((H2, H1), lambda i: (0, 0)),   # w2 (16, 256)  (torch (out,in))
            pl.BlockSpec((H2, 1), lambda i: (0, 0)),    # b2 (16, 1)
            pl.BlockSpec((H2, 1), lambda i: (0, 0)),    # w3 (16, 1)
            pl.BlockSpec((1, 1), lambda i: (0, 0)),     # b3 (1, 1)
        ],
        out_specs=pl.BlockSpec((1, TB), lambda i: (0, i)),
        compiler_params=pltpu.CompilerParams(
            dimension_semantics=("parallel",),
            vmem_limit_bytes=32 << 20,
        ),
    )(x, w1, b1, w2, b2, w3, b3)

    # (1, B_pad) lane-dense result -> (B, 1)
    return out.reshape(B_pad, 1)[:B]


def init_params(key, input_size=16 * 16 * 4):
    """Deterministic init mimicking torch.nn.Linear (uniform +-1/sqrt(fan_in)).

    Layout: w1 (in,out); w2 (out,in) [torch native]; b2/w3 column vectors.
    """
    specs = [
        ("w1", (input_size, 256), input_size),
        ("b1", (1, 256), input_size),
        ("w2", (16, 256), 256),
        ("b2", (16, 1), 256),
        ("w3", (16, 1), 16),
        ("b3", (1, 1), 16),
    ]
    params = {}
    for name, shape, fan_in in specs:
        key, sub = jax.random.split(key)
        bound = 1.0 / float(fan_in) ** 0.5
        params[name] = jax.random.uniform(sub, shape, jnp.float32, -bound, bound)
    return params


def value_net_ref(x, params):
    xf = x.reshape(x.shape[0], -1).astype(jnp.float32)
    h1 = jnp.maximum(xf @ params["w1"] + params["b1"], 0.0)
    h2 = jnp.maximum(h1 @ params["w2"].T + params["b2"].T, 0.0)
    return h2 @ params["w3"] + params["b3"]


if __name__ == "__main__":
    key = jax.random.PRNGKey(0)
    k_params, k_x = jax.random.split(key)

    B, C, H, W = 2, 4, 16, 16            # flattened input size = 16*16*4 = 1024
    params = init_params(k_params, C * H * W)
    x = jax.random.normal(k_x, (B, C, H, W), jnp.float32)

    fwd = jax.jit(lambda xx: value_net_forward(xx, params))
    out = jax.block_until_ready(fwd(x))

    ref = value_net_ref(x, params)
    assert out.shape == (B, 1), out.shape
    assert jnp.allclose(out, ref, atol=1e-4, rtol=1e-4), "mismatch vs reference"

    print("KERNEL_OK")
</pallas_src>

<mosaic_0001>
module attributes {stable_mosaic.version = 11 : i64} {
  func.func @valuenet_kernel(%arg0: i32, %arg1: memref<256x1024xf32, #tpu.memory_space<vmem>>, %arg2: memref<1024x256xf32, #tpu.memory_space<vmem>>, %arg3: memref<1x256xf32, #tpu.memory_space<vmem>>, %arg4: memref<16x256xf32, #tpu.memory_space<vmem>>, %arg5: memref<16x1xf32, #tpu.memory_space<vmem>>, %arg6: memref<16x1xf32, #tpu.memory_space<vmem>>, %arg7: memref<1x1xf32, #tpu.memory_space<vmem>>, %arg8: memref<1x256xf32, #tpu.memory_space<vmem>>) attributes {dimension_semantics = [#tpu.dimension_semantics<parallel>], iteration_bounds = array<i64: 1>, scalar_prefetch = 0 : i64, scratch_operands = 0 : i64, tpu.core_type = #tpu.core_type<tc>, window_params = [{transform_indices = @transform_0, window_bounds = array<i64: 256, 1024>}, {pipeline_mode = #tpu.pipeline_mode<synchronous>, transform_indices = @transform_1, window_bounds = array<i64: 1024, 256>}, {pipeline_mode = #tpu.pipeline_mode<synchronous>, transform_indices = @transform_2, window_bounds = array<i64: 1, 256>}, {pipeline_mode = #tpu.pipeline_mode<synchronous>, transform_indices = @transform_3, window_bounds = array<i64: 16, 256>}, {pipeline_mode = #tpu.pipeline_mode<synchronous>, transform_indices = @transform_4, window_bounds = array<i64: 16, 1>}, {pipeline_mode = #tpu.pipeline_mode<synchronous>, transform_indices = @transform_5, window_bounds = array<i64: 16, 1>}, {pipeline_mode = #tpu.pipeline_mode<synchronous>, transform_indices = @transform_6, window_bounds = array<i64: 1, 1>}, {transform_indices = @transform_7, window_bounds = array<i64: 1, 256>}]} {
    %c0 = arith.constant 0 : index
    %c0_0 = arith.constant 0 : index
    %0 = vector.load %arg1[%c0, %c0_0] : memref<256x1024xf32, #tpu.memory_space<vmem>>, vector<256x1024xf32>
    %c0_1 = arith.constant 0 : index
    %c0_2 = arith.constant 0 : index
    %1 = vector.load %arg2[%c0_1, %c0_2] : memref<1024x256xf32, #tpu.memory_space<vmem>>, vector<1024x256xf32>
    %cst = arith.constant dense<0.000000e+00> : vector<256x256xf32>
    %2 = tpu.matmul %0, %1, %cst {dimension_numbers = #tpu.dot_dimension_numbers<[1], [0], [0], [1], [0, 0, 1, 1], [], []>} : vector<256x1024xf32>, vector<1024x256xf32>, vector<256x256xf32> -> vector<256x256xf32>
    %c0_3 = arith.constant 0 : index
    %c0_4 = arith.constant 0 : index
    %3 = vector.load %arg3[%c0_3, %c0_4] : memref<1x256xf32, #tpu.memory_space<vmem>>, vector<1x256xf32>
    %4 = vector.broadcast %3 : vector<1x256xf32> to vector<256x256xf32>
    %5 = arith.addf %2, %4 : vector<256x256xf32>
    %cst_5 = arith.constant 0.000000e+00 : f32
    %6 = vector.broadcast %cst_5 : f32 to vector<256x256xf32>
    %7 = arith.maximumf %5, %6 : vector<256x256xf32>
    %8 = tpu.transpose %7, [1, 0] : vector<256x256xf32> -> vector<256x256xf32>
    %c0_6 = arith.constant 0 : index
    %c0_7 = arith.constant 0 : index
    %9 = vector.load %arg4[%c0_6, %c0_7] : memref<16x256xf32, #tpu.memory_space<vmem>>, vector<16x256xf32>
    %cst_8 = arith.constant dense<0.000000e+00> : vector<16x256xf32>
    %10 = tpu.matmul %9, %8, %cst_8 {dimension_numbers = #tpu.dot_dimension_numbers<[1], [0], [0], [1], [0, 0, 1, 1], [], []>} : vector<16x256xf32>, vector<256x256xf32>, vector<16x256xf32> -> vector<16x256xf32>
    %c0_9 = arith.constant 0 : index
    %c0_10 = arith.constant 0 : index
    %11 = vector.load %arg5[%c0_9, %c0_10] : memref<16x1xf32, #tpu.memory_space<vmem>>, vector<16x1xf32>
    %12 = vector.broadcast %11 : vector<16x1xf32> to vector<16x256xf32>
    %13 = arith.addf %10, %12 : vector<16x256xf32>
    %cst_11 = arith.constant 0.000000e+00 : f32
    %14 = vector.broadcast %cst_11 : f32 to vector<16x256xf32>
    %15 = arith.maximumf %13, %14 : vector<16x256xf32>
    %c0_12 = arith.constant 0 : index
    %c0_13 = arith.constant 0 : index
    %16 = vector.load %arg6[%c0_12, %c0_13] : memref<16x1xf32, #tpu.memory_space<vmem>>, vector<16x1xf32>
    %17 = vector.broadcast %16 : vector<16x1xf32> to vector<16x256xf32>
    %18 = arith.mulf %15, %17 : vector<16x256xf32>
    %cst_14 = arith.constant dense<0.000000e+00> : vector<256xf32>
    %19 = vector.multi_reduction <add>, %18, %cst_14 [0] : vector<16x256xf32> to vector<256xf32>
    %20 = vector.shape_cast %19 : vector<256xf32> to vector<1x256xf32>
    %c0_15 = arith.constant 0 : index
    %c0_16 = arith.constant 0 : index
    %21 = vector.load %arg7[%c0_15, %c0_16] : memref<1x1xf32, #tpu.memory_space<vmem>>, vector<1x1xf32>
    %22 = vector.broadcast %21 : vector<1x1xf32> to vector<1x256xf32>
    %23 = arith.addf %20, %22 : vector<1x256xf32>
    %c0_17 = arith.constant 0 : index
    %c0_18 = arith.constant 0 : index
    %24 = vector.load %arg8[%c0_17, %c0_18] : memref<1x256xf32, #tpu.memory_space<vmem>>, vector<1x256xf32>
    tpu.vector_store %arg8[%c0_17, %c0_18], %23 {strides = array<i32>} : memref<1x256xf32, #tpu.memory_space<vmem>>, vector<1x256xf32>,
    return
  }
  func.func @transform_0(%arg0: i32) -> (i32, i32) {
    %c0_i32 = arith.constant 0 : i32
    %c0_i32_0 = arith.constant 0 : i32
    return %arg0, %c0_i32 : i32, i32
  }
  func.func @transform_1(%arg0: i32) -> (i32, i32) {
    %c0_i32 = arith.constant 0 : i32
    %c0_i32_0 = arith.constant 0 : i32
    %c0_i32_1 = arith.constant 0 : i32
    return %c0_i32, %c0_i32_0 : i32, i32
  }
  func.func @transform_2(%arg0: i32) -> (i32, i32) {
    %c0_i32 = arith.constant 0 : i32
    %c0_i32_0 = arith.constant 0 : i32
    %c0_i32_1 = arith.constant 0 : i32
    return %c0_i32, %c0_i32_0 : i32, i32
  }
  func.func @transform_3(%arg0: i32) -> (i32, i32) {
    %c0_i32 = arith.constant 0 : i32
    %c0_i32_0 = arith.constant 0 : i32
    %c0_i32_1 = arith.constant 0 : i32
    return %c0_i32, %c0_i32_0 : i32, i32
  }
  func.func @transform_4(%arg0: i32) -> (i32, i32) {
    %c0_i32 = arith.constant 0 : i32
    %c0_i32_0 = arith.constant 0 : i32
    %c0_i32_1 = arith.constant 0 : i32
    return %c0_i32, %c0_i32_0 : i32, i32
  }
  func.func @transform_5(%arg0: i32) -> (i32, i32) {
    %c0_i32 = arith.constant 0 : i32
    %c0_i32_0 = arith.constant 0 : i32
    %c0_i32_1 = arith.constant 0 : i32
    return %c0_i32, %c0_i32_0 : i32, i32
  }
  func.func @transform_6(%arg0: i32) -> (i32, i32) {
    %c0_i32 = arith.constant 0 : i32
    %c0_i32_0 = arith.constant 0 : i32
    %c0_i32_1 = arith.constant 0 : i32
    return %c0_i32, %c0_i32_0 : i32, i32
  }
  func.func @transform_7(%arg0: i32) -> (i32, i32) {
    %c0_i32 = arith.constant 0 : i32
    %c0_i32_0 = arith.constant 0 : i32
    return %c0_i32, %arg0 : i32, i32
  }
}

</mosaic_0001>

<bundles_post_ra>
// kernel: _lambda_.1
= control target key start
LH: loop header
LB: loop body
LE: loop exit
PB: predicated region body
PF: predicated region fallthrough
CT: control target
= control target key end

     0   :  { %s4112_s1 = inlined_call_operand.vmem [shape: f32[1024,256], index: 1, kind: input, shape index: {}]   ;;  %s4113_s0 = inlined_call_operand.vmem [shape: f32[256,1024], index: 0, kind: input, shape index: {}]   ;;  %s4114_s2 = inlined_call_operand.vmem [shape: f32[1,256], index: 2, kind: input, shape index: {}]   ;;  %s4115_s3 = inlined_call_operand.vmem [shape: f32[16,256], index: 3, kind: input, shape index: {}]   ;;  %s4116_s4 = inlined_call_operand.vmem [shape: f32[16,1], index: 4, kind: input, shape index: {}]   ;;  %s4117_s5 = inlined_call_operand.vmem [shape: f32[16,1], index: 5, kind: input, shape index: {}]   ;;  %s4118_s6 = inlined_call_operand.<no memory space> [shape: f32[1,1], index: 6, kind: input, shape index: {}]   ;;  %s4119_s7 = inlined_call_operand.vmem [shape: f32[1,256], index: 7, kind: output, shape index: {}]  }
   0x1   :  { %v285_v0 = vld [vmem:[%s4112_s1 + $0x8] sm:$0xff]  ;;  %v287_v1 = vld [vmem:[%s4112_s1 + $0x18] sm:$0xff]  ;;  %v284_v5 = vld [vmem:[%s4112_s1] sm:$0xff] }
   0x2   :  { %v413_v2 = vld [vmem:[%s4112_s1 + $0x408] sm:$0xff]  ;;  %v1810_v3 = vpack.c.bf16 %v287_v1, %v285_v0  ;;  %v415_v4 = vld [vmem:[%s4112_s1 + $0x418] sm:$0xff]  ;;  %v286_v6 = vld [vmem:[%s4112_s1 + $0x10] sm:$0xff] }
   0x3   :  { %v1938_v7 = vpack.c.bf16 %v415_v4, %v413_v2  ;;  %v1812_v8 = vpack.c.bf16 %v286_v6, %v284_v5  ;;  %v412_v9 = vld [vmem:[%s4112_s1 + $0x400] sm:$0xff]  ;;  %v414_v10 = vld [vmem:[%s4112_s1 + $0x410] sm:$0xff]  ;;  %v289_v11 = vld [vmem:[%s4112_s1 + $0x28] sm:$0xff] }
   0x4   :  { %1811 = vmatprep.subr.bf16.mxu1 %v1810_v3  ;;  %v1940_v12 = vpack.c.bf16 %v414_v10, %v412_v9  ;;  %v291_v13 = vld [vmem:[%s4112_s1 + $0x38] sm:$0xff]  ;;  %v417_v14 = vld [vmem:[%s4112_s1 + $0x428] sm:$0xff]  ;;  %v288_v18 = vld [vmem:[%s4112_s1 + $0x20] sm:$0xff] }
   0x5   :  { %v419_v15 = vld [vmem:[%s4112_s1 + $0x438] sm:$0xff]  ;;  %1939 = vmatprep.subr.bf16.mxu0 %v1938_v7  ;;  %1813 = vmatpush1.bf16.msra.mxu1 %v1812_v8  ;;  %v1814_v16 = vpack.c.bf16 %v291_v13, %v289_v11  ;;  %v290_v19 = vld [vmem:[%s4112_s1 + $0x30] sm:$0xff]  ;;  %v416_v20 = vld [vmem:[%s4112_s1 + $0x420] sm:$0xff] }
   0x6   :  { %v1942_v17 = vpack.c.bf16 %v419_v15, %v417_v14  ;;  %1941 = vmatpush1.bf16.msra.mxu0 %v1940_v12  ;;  %v1816_v21 = vpack.c.bf16 %v290_v19, %v288_v18  ;;  %v418_v22 = vld [vmem:[%s4112_s1 + $0x430] sm:$0xff]  ;;  %v293_v23 = vld [vmem:[%s4112_s1 + $0x48] sm:$0xff]  ;;  %v295_v24 = vld [vmem:[%s4112_s1 + $0x58] sm:$0xff] }
   0x7   :  { %1815 = vmatprep.subr.bf16.mxu1 %v1814_v16  ;;  %v1944_v25 = vpack.c.bf16 %v418_v22, %v416_v20  ;;  %v1818_v26 = vpack.c.bf16 %v295_v24, %v293_v23  ;;  %v421_v27 = vld [vmem:[%s4112_s1 + $0x448] sm:$0xff]  ;;  %v423_v28 = vld [vmem:[%s4112_s1 + $0x458] sm:$0xff]  ;;  %v292_v29 = vld [vmem:[%s4112_s1 + $0x40] sm:$0xff] }
   0x8   :  { %1943 = vmatprep.subr.bf16.mxu0 %v1942_v17  ;;  %v1946_v30 = vpack.c.bf16 %v423_v28, %v421_v27  ;;  %v294_v31 = vld [vmem:[%s4112_s1 + $0x50] sm:$0xff]  ;;  %v420_v32 = vld [vmem:[%s4112_s1 + $0x440] sm:$0xff]  ;;  %v297_v35 = vld [vmem:[%s4112_s1 + $0x68] sm:$0xff] }
   0x9   :  { %v422_v33 = vld [vmem:[%s4112_s1 + $0x450] sm:$0xff]  ;;  %1817 = vmatpush1.bf16.msra.mxu1 %v1816_v21  ;;  %v1820_v34 = vpack.c.bf16 %v294_v31, %v292_v29  ;;  %v299_v36 = vld [vmem:[%s4112_s1 + $0x78] sm:$0xff]  ;;  %v425_v37 = vld [vmem:[%s4112_s1 + $0x468] sm:$0xff] }
   0xa   :  { %1945 = vmatpush1.bf16.msra.mxu0 %v1944_v25  ;;  %1819 = vmatprep.subr.bf16.mxu1 %v1818_v26  ;;  %v1948_v38 = vpack.c.bf16 %v422_v33, %v420_v32  ;;  %v1822_v39 = vpack.c.bf16 %v299_v36, %v297_v35  ;;  %v427_v40 = vld [vmem:[%s4112_s1 + $0x478] sm:$0xff]  ;;  %v296_v41 = vld [vmem:[%s4112_s1 + $0x60] sm:$0xff]  ;;  %v298_v42 = vld [vmem:[%s4112_s1 + $0x70] sm:$0xff] }
   0xb   :  { %1947 = vmatprep.subr.bf16.mxu0 %v1946_v30  ;;  %v1950_v43 = vpack.c.bf16 %v427_v40, %v425_v37  ;;  %v424_v44 = vld [vmem:[%s4112_s1 + $0x460] sm:$0xff]  ;;  %v426_v45 = vld [vmem:[%s4112_s1 + $0x470] sm:$0xff]  ;;  %v301_v46 = vld [vmem:[%s4112_s1 + $0x88] sm:$0xff]  ;;  %v1824_v50 = vpack.c.bf16 %v298_v42, %v296_v41 }
   0xc   :  { %v303_v47 = vld [vmem:[%s4112_s1 + $0x98] sm:$0xff]  ;;  %v429_v48 = vld [vmem:[%s4112_s1 + $0x488] sm:$0xff]  ;;  %v1952_v51 = vpack.c.bf16 %v426_v45, %v424_v44  ;;  %v300_v53 = vld [vmem:[%s4112_s1 + $0x80] sm:$0xff] }
   0xd   :  { %v431_v49 = vld [vmem:[%s4112_s1 + $0x498] sm:$0xff]  ;;  %1821 = vmatpush1.bf16.msra.mxu1 %v1820_v34  ;;  %v1826_v52 = vpack.c.bf16 %v303_v47, %v301_v46  ;;  %v302_v54 = vld [vmem:[%s4112_s1 + $0x90] sm:$0xff]  ;;  %v428_v55 = vld [vmem:[%s4112_s1 + $0x480] sm:$0xff] }
   0xe   :  { %1949 = vmatpush1.bf16.msra.mxu0 %v1948_v38  ;;  %1823 = vmatprep.subr.bf16.mxu1 %v1822_v39  ;;  %v1954_v56 = vpack.c.bf16 %v431_v49, %v429_v48  ;;  %v430_v57 = vld [vmem:[%s4112_s1 + $0x490] sm:$0xff]  ;;  %v305_v58 = vld [vmem:[%s4112_s1 + $0xa8] sm:$0xff]  ;;  %v307_v59 = vld [vmem:[%s4112_s1 + $0xb8] sm:$0xff]  ;;  %v1828_v62 = vpack.c.bf16 %v302_v54, %v300_v53 }
   0xf   :  { %1951 = vmatprep.subr.bf16.mxu0 %v1950_v43  ;;  %v433_v60 = vld [vmem:[%s4112_s1 + $0x4a8] sm:$0xff]  ;;  %v435_v61 = vld [vmem:[%s4112_s1 + $0x4b8] sm:$0xff]  ;;  %v1956_v63 = vpack.c.bf16 %v430_v57, %v428_v55  ;;  %v1830_v0 = vpack.c.bf16 %v307_v59, %v305_v58  ;;  %v304_v1 = vld [vmem:[%s4112_s1 + $0xa0] sm:$0xff] }
  0x10   :  { %v306_v2 = vld [vmem:[%s4112_s1 + $0xb0] sm:$0xff]  ;;  %v432_v3 = vld [vmem:[%s4112_s1 + $0x4a0] sm:$0xff]  ;;  %v1958_v4 = vpack.c.bf16 %v435_v61, %v433_v60  ;;  %v309_v6 = vld [vmem:[%s4112_s1 + $0xc8] sm:$0xff] }
  0x11   :  { %1825 = vmatpush1.bf16.msra.mxu1 %v1824_v50  ;;  %v434_v5 = vld [vmem:[%s4112_s1 + $0x4b0] sm:$0xff]  ;;  %v311_v7 = vld [vmem:[%s4112_s1 + $0xd8] sm:$0xff]  ;;  %v437_v8 = vld [vmem:[%s4112_s1 + $0x4c8] sm:$0xff]  ;;  %v1832_v10 = vpack.c.bf16 %v306_v2, %v304_v1 }
  0x12   :  { %1953 = vmatpush1.bf16.msra.mxu0 %v1952_v51  ;;  %1827 = vmatprep.subr.bf16.mxu1 %v1826_v52  ;;  %v439_v9 = vld [vmem:[%s4112_s1 + $0x4d8] sm:$0xff]  ;;  %v1960_v11 = vpack.c.bf16 %v434_v5, %v432_v3  ;;  %v1834_v12 = vpack.c.bf16 %v311_v7, %v309_v6  ;;  %v308_v13 = vld [vmem:[%s4112_s1 + $0xc0] sm:$0xff]  ;;  %v310_v14 = vld [vmem:[%s4112_s1 + $0xd0] sm:$0xff] }
  0x13   :  { %1955 = vmatprep.subr.bf16.mxu0 %v1954_v56  ;;  %v436_v15 = vld [vmem:[%s4112_s1 + $0x4c0] sm:$0xff]  ;;  %v1962_v16 = vpack.c.bf16 %v439_v9, %v437_v8  ;;  %v438_v17 = vld [vmem:[%s4112_s1 + $0x4d0] sm:$0xff]  ;;  %v313_v18 = vld [vmem:[%s4112_s1 + $0xe8] sm:$0xff]  ;;  %v1836_v22 = vpack.c.bf16 %v310_v14, %v308_v13 }
  0x14   :  { %v315_v19 = vld [vmem:[%s4112_s1 + $0xf8] sm:$0xff]  ;;  %v441_v20 = vld [vmem:[%s4112_s1 + $0x4e8] sm:$0xff]  ;;  %v1964_v23 = vpack.c.bf16 %v438_v17, %v436_v15  ;;  %v312_v25 = vld [vmem:[%s4112_s1 + $0xe0] sm:$0xff] }
  0x15   :  { %1829 = vmatpush1.bf16.msra.mxu1 %v1828_v62  ;;  %v443_v21 = vld [vmem:[%s4112_s1 + $0x4f8] sm:$0xff]  ;;  %v1838_v24 = vpack.c.bf16 %v315_v19, %v313_v18  ;;  %v314_v26 = vld [vmem:[%s4112_s1 + $0xf0] sm:$0xff]  ;;  %v440_v27 = vld [vmem:[%s4112_s1 + $0x4e0] sm:$0xff] }
  0x16   :  { %1957 = vmatpush1.bf16.msra.mxu0 %v1956_v63  ;;  %1831 = vmatprep.subr.bf16.mxu1 %v1830_v0  ;;  %v1966_v28 = vpack.c.bf16 %v443_v21, %v441_v20  ;;  %v442_v29 = vld [vmem:[%s4112_s1 + $0x4f0] sm:$0xff]  ;;  %v317_v30 = vld [vmem:[%s4112_s1 + $0x108] sm:$0xff]  ;;  %v319_v31 = vld [vmem:[%s4112_s1 + $0x118] sm:$0xff]  ;;  %v1840_v34 = vpack.c.bf16 %v314_v26, %v312_v25 }
  0x17   :  { %1959 = vmatprep.subr.bf16.mxu0 %v1958_v4  ;;  %v445_v32 = vld [vmem:[%s4112_s1 + $0x508] sm:$0xff]  ;;  %v447_v33 = vld [vmem:[%s4112_s1 + $0x518] sm:$0xff]  ;;  %v1968_v35 = vpack.c.bf16 %v442_v29, %v440_v27  ;;  %v1842_v36 = vpack.c.bf16 %v319_v31, %v317_v30  ;;  %v316_v37 = vld [vmem:[%s4112_s1 + $0x100] sm:$0xff] }
  0x18   :  { %v318_v38 = vld [vmem:[%s4112_s1 + $0x110] sm:$0xff]  ;;  %v444_v39 = vld [vmem:[%s4112_s1 + $0x500] sm:$0xff]  ;;  %v1970_v40 = vpack.c.bf16 %v447_v33, %v445_v32  ;;  %v321_v42 = vld [vmem:[%s4112_s1 + $0x128] sm:$0xff] }
  0x19   :  { %1833 = vmatpush1.bf16.msra.mxu1 %v1832_v10  ;;  %v446_v41 = vld [vmem:[%s4112_s1 + $0x510] sm:$0xff]  ;;  %v323_v43 = vld [vmem:[%s4112_s1 + $0x138] sm:$0xff]  ;;  %v449_v44 = vld [vmem:[%s4112_s1 + $0x528] sm:$0xff]  ;;  %v1844_v46 = vpack.c.bf16 %v318_v38, %v316_v37 }
  0x1a   :  { %1961 = vmatpush1.bf16.msra.mxu0 %v1960_v11  ;;  %1835 = vmatprep.subr.bf16.mxu1 %v1834_v12  ;;  %v451_v45 = vld [vmem:[%s4112_s1 + $0x538] sm:$0xff]  ;;  %v1972_v47 = vpack.c.bf16 %v446_v41, %v444_v39  ;;  %v1846_v48 = vpack.c.bf16 %v323_v43, %v321_v42  ;;  %v320_v49 = vld [vmem:[%s4112_s1 + $0x120] sm:$0xff]  ;;  %v322_v50 = vld [vmem:[%s4112_s1 + $0x130] sm:$0xff] }
  0x1b   :  { %1963 = vmatprep.subr.bf16.mxu0 %v1962_v16  ;;  %v448_v51 = vld [vmem:[%s4112_s1 + $0x520] sm:$0xff]  ;;  %v1974_v52 = vpack.c.bf16 %v451_v45, %v449_v44  ;;  %v450_v53 = vld [vmem:[%s4112_s1 + $0x530] sm:$0xff]  ;;  %v325_v54 = vld [vmem:[%s4112_s1 + $0x148] sm:$0xff]  ;;  %v1848_v58 = vpack.c.bf16 %v322_v50, %v320_v49 }
  0x1c   :  { %v327_v55 = vld [vmem:[%s4112_s1 + $0x158] sm:$0xff]  ;;  %v453_v56 = vld [vmem:[%s4112_s1 + $0x548] sm:$0xff]  ;;  %v1976_v59 = vpack.c.bf16 %v450_v53, %v448_v51  ;;  %v324_v61 = vld [vmem:[%s4112_s1 + $0x140] sm:$0xff] }
  0x1d   :  { %1837 = vmatpush1.bf16.msra.mxu1 %v1836_v22  ;;  %v455_v57 = vld [vmem:[%s4112_s1 + $0x558] sm:$0xff]  ;;  %v1850_v60 = vpack.c.bf16 %v327_v55, %v325_v54  ;;  %v326_v62 = vld [vmem:[%s4112_s1 + $0x150] sm:$0xff]  ;;  %v452_v63 = vld [vmem:[%s4112_s1 + $0x540] sm:$0xff] }
  0x1e   :  { %1965 = vmatpush1.bf16.msra.mxu0 %v1964_v23  ;;  %1839 = vmatprep.subr.bf16.mxu1 %v1838_v24  ;;  %v1978_v0 = vpack.c.bf16 %v455_v57, %v453_v56  ;;  %v454_v1 = vld [vmem:[%s4112_s1 + $0x550] sm:$0xff]  ;;  %v329_v2 = vld [vmem:[%s4112_s1 + $0x168] sm:$0xff]  ;;  %v331_v3 = vld [vmem:[%s4112_s1 + $0x178] sm:$0xff]  ;;  %v1852_v6 = vpack.c.bf16 %v326_v62, %v324_v61 }
  0x1f   :  { %1967 = vmatprep.subr.bf16.mxu0 %v1966_v28  ;;  %v457_v4 = vld [vmem:[%s4112_s1 + $0x568] sm:$0xff]  ;;  %v459_v5 = vld [vmem:[%s4112_s1 + $0x578] sm:$0xff]  ;;  %v328_v7 = vld [vmem:[%s4112_s1 + $0x160] sm:$0xff]  ;;  %v1980_v8 = vpack.c.bf16 %v454_v1, %v452_v63  ;;  %v1854_v9 = vpack.c.bf16 %v331_v3, %v329_v2 }
  0x20   :  { %v330_v10 = vld [vmem:[%s4112_s1 + $0x170] sm:$0xff]  ;;  %v456_v11 = vld [vmem:[%s4112_s1 + $0x560] sm:$0xff]  ;;  %v1982_v13 = vpack.c.bf16 %v459_v5, %v457_v4  ;;  %v333_v14 = vld [vmem:[%s4112_s1 + $0x188] sm:$0xff] }
  0x21   :  { %1841 = vmatpush1.bf16.msra.mxu1 %v1840_v34  ;;  %v458_v12 = vld [vmem:[%s4112_s1 + $0x570] sm:$0xff]  ;;  %v335_v15 = vld [vmem:[%s4112_s1 + $0x198] sm:$0xff]  ;;  %v29_v16 = vld [vmem:[%s4113_s0 + $0x8] sm:$0xff]  ;;  %v1856_v20 = vpack.c.bf16 %v330_v10, %v328_v7 }
  0x22   :  { %1969 = vmatpush1.bf16.msra.mxu0 %v1968_v35  ;;  %1843 = vmatprep.subr.bf16.mxu1 %v1842_v36  ;;  %v461_v17 = vld [vmem:[%s4112_s1 + $0x588] sm:$0xff]  ;;  %v463_v18 = vld [vmem:[%s4112_s1 + $0x598] sm:$0xff]  ;;  %v1984_v21 = vpack.c.bf16 %v458_v12, %v456_v11  ;;  %v1858_v22 = vpack.c.bf16 %v335_v15, %v333_v14  ;;  %v332_v23 = vld [vmem:[%s4112_s1 + $0x180] sm:$0xff] }
  0x23   :  { %1971 = vmatprep.subr.bf16.mxu0 %v1970_v40  ;;  %616 = vmatprep.mubr.f32.mxu1 %v29_v16  ;;  %v33_v19 = vld [vmem:[%s4113_s0 + $0x28] sm:$0xff]  ;;  %v334_v24 = vld [vmem:[%s4112_s1 + $0x190] sm:$0xff]  ;;  %v460_v25 = vld [vmem:[%s4112_s1 + $0x580] sm:$0xff]  ;;  %v1986_v26 = vpack.c.bf16 %v463_v18, %v461_v17 }
  0x24   :  { %1130 = vmatprep.mubr.f32.mxu0 %v33_v19  ;;  %v462_v27 = vld [vmem:[%s4112_s1 + $0x590] sm:$0xff]  ;;  %v337_v28 = vld [vmem:[%s4112_s1 + $0x1a8] sm:$0xff]  ;;  %v339_v29 = vld [vmem:[%s4112_s1 + $0x1b8] sm:$0xff]  ;;  %v1860_v32 = vpack.c.bf16 %v334_v24, %v332_v23 }
  0x25   :  { %1845 = vmatpush1.bf16.msra.mxu1 %v1844_v46  ;;  %v465_v30 = vld [vmem:[%s4112_s1 + $0x5a8] sm:$0xff]  ;;  %v467_v31 = vld [vmem:[%s4112_s1 + $0x5b8] sm:$0xff]  ;;  %v1988_v33 = vpack.c.bf16 %v462_v27, %v460_v25  ;;  %v1862_v34 = vpack.c.bf16 %v339_v29, %v337_v28  ;;  %v336_v35 = vld [vmem:[%s4112_s1 + $0x1a0] sm:$0xff] }
  0x26   :  { %1973 = vmatpush1.bf16.msra.mxu0 %v1972_v47  ;;  %1847 = vmatprep.subr.bf16.mxu1 %v1846_v48  ;;  %v338_v36 = vld [vmem:[%s4112_s1 + $0x1b0] sm:$0xff]  ;;  %v464_v37 = vld [vmem:[%s4112_s1 + $0x5a0] sm:$0xff]  ;;  %v1990_v38 = vpack.c.bf16 %v467_v31, %v465_v30  ;;  %v341_v40 = vld [vmem:[%s4112_s1 + $0x1c8] sm:$0xff] }
  0x27   :  { %1975 = vmatprep.subr.bf16.mxu0 %v1974_v52  ;;  %v466_v39 = vld [vmem:[%s4112_s1 + $0x5b0] sm:$0xff]  ;;  %v343_v41 = vld [vmem:[%s4112_s1 + $0x1d8] sm:$0xff]  ;;  %v469_v42 = vld [vmem:[%s4112_s1 + $0x5c8] sm:$0xff]  ;;  %v1864_v44 = vpack.c.bf16 %v338_v36, %v336_v35 }
  0x28   :  { %v471_v43 = vld [vmem:[%s4112_s1 + $0x5d8] sm:$0xff]  ;;  %v1992_v45 = vpack.c.bf16 %v466_v39, %v464_v37  ;;  %v1866_v46 = vpack.c.bf16 %v343_v41, %v341_v40  ;;  %v340_v47 = vld [vmem:[%s4112_s1 + $0x1c0] sm:$0xff]  ;;  %v342_v48 = vld [vmem:[%s4112_s1 + $0x1d0] sm:$0xff] }
  0x29   :  { %1849 = vmatpush1.bf16.msra.mxu1 %v1848_v58  ;;  %v468_v49 = vld [vmem:[%s4112_s1 + $0x5c0] sm:$0xff]  ;;  %v1994_v50 = vpack.c.bf16 %v471_v43, %v469_v42  ;;  %v470_v51 = vld [vmem:[%s4112_s1 + $0x5d0] sm:$0xff]  ;;  %v345_v52 = vld [vmem:[%s4112_s1 + $0x1e8] sm:$0xff]  ;;  %v1868_v56 = vpack.c.bf16 %v342_v48, %v340_v47 }
  0x2a   :  { %1977 = vmatpush1.bf16.msra.mxu0 %v1976_v59  ;;  %1851 = vmatprep.subr.bf16.mxu1 %v1850_v60  ;;  %v347_v53 = vld [vmem:[%s4112_s1 + $0x1f8] sm:$0xff]  ;;  %v473_v54 = vld [vmem:[%s4112_s1 + $0x5e8] sm:$0xff]  ;;  %v1996_v57 = vpack.c.bf16 %v470_v51, %v468_v49  ;;  %v344_v59 = vld [vmem:[%s4112_s1 + $0x1e0] sm:$0xff] }
  0x2b   :  { %1979 = vmatprep.subr.bf16.mxu0 %v1978_v0  ;;  %v475_v55 = vld [vmem:[%s4112_s1 + $0x5f8] sm:$0xff]  ;;  %v1870_v58 = vpack.c.bf16 %v347_v53, %v345_v52  ;;  %v346_v60 = vld [vmem:[%s4112_s1 + $0x1f0] sm:$0xff]  ;;  %v472_v61 = vld [vmem:[%s4112_s1 + $0x5e0] sm:$0xff] }
  0x2c   :  { %v1998_v62 = vpack.c.bf16 %v475_v55, %v473_v54  ;;  %v474_v63 = vld [vmem:[%s4112_s1 + $0x5f0] sm:$0xff]  ;;  %v349_v0 = vld [vmem:[%s4112_s1 + $0x208] sm:$0xff]  ;;  %v351_v1 = vld [vmem:[%s4112_s1 + $0x218] sm:$0xff]  ;;  %v1872_v4 = vpack.c.bf16 %v346_v60, %v344_v59 }
  0x2d   :  { %1853 = vmatpush1.bf16.msra.mxu1 %v1852_v6  ;;  %v477_v2 = vld [vmem:[%s4112_s1 + $0x608] sm:$0xff]  ;;  %v479_v3 = vld [vmem:[%s4112_s1 + $0x618] sm:$0xff]  ;;  %v2000_v5 = vpack.c.bf16 %v474_v63, %v472_v61  ;;  %v1874_v6 = vpack.c.bf16 %v351_v1, %v349_v0  ;;  %v348_v7 = vld [vmem:[%s4112_s1 + $0x200] sm:$0xff] }
  0x2e   :  { %1981 = vmatpush1.bf16.msra.mxu0 %v1980_v8  ;;  %1855 = vmatprep.subr.bf16.mxu1 %v1854_v9  ;;  %v350_v8 = vld [vmem:[%s4112_s1 + $0x210] sm:$0xff]  ;;  %v2002_v9 = vpack.c.bf16 %v479_v3, %v477_v2  ;;  %v476_v10 = vld [vmem:[%s4112_s1 + $0x600] sm:$0xff]  ;;  %v353_v12 = vld [vmem:[%s4112_s1 + $0x228] sm:$0xff] }
  0x2f   :  { %1983 = vmatprep.subr.bf16.mxu0 %v1982_v13  ;;  %v478_v11 = vld [vmem:[%s4112_s1 + $0x610] sm:$0xff]  ;;  %v355_v13 = vld [vmem:[%s4112_s1 + $0x238] sm:$0xff]  ;;  %v28_v14 = vld [vmem:[%s4113_s0] sm:$0xff]  ;;  %v1876_v15 = vpack.c.bf16 %v350_v8, %v348_v7 }
  0x30   :  { %v481_v16 = vld [vmem:[%s4112_s1 + $0x628] sm:$0xff]  ;;  %v483_v17 = vld [vmem:[%s4112_s1 + $0x638] sm:$0xff]  ;;  %v32_v18 = vld [vmem:[%s4113_s0 + $0x20] sm:$0xff] }
  0x31   :  { %1857 = vmatpush1.bf16.msra.mxu1 %v1856_v20  ;;  %v37_v19 = vld [vmem:[%s4113_s0 + $0x48] sm:$0xff]  ;;  %v352_v23 = vld [vmem:[%s4112_s1 + $0x220] sm:$0xff]  ;;  %v354_v24 = vld [vmem:[%s4112_s1 + $0x230] sm:$0xff] }
  0x32   :  { %1985 = vmatpush1.bf16.msra.mxu0 %v1984_v21  ;;  %1859 = vmatprep.subr.bf16.mxu1 %v1858_v22  ;;  %v41_v20 = vld [vmem:[%s4113_s0 + $0x68] sm:$0xff]  ;;  %v2004_v21 = vpack.c.bf16 %v478_v11, %v476_v10  ;;  %v1878_v22 = vpack.c.bf16 %v355_v13, %v353_v12  ;;  %v480_v25 = vld [vmem:[%s4112_s1 + $0x620] sm:$0xff]  ;;  %v482_v27 = vld [vmem:[%s4112_s1 + $0x630] sm:$0xff]  ;;  %v1880_v36 = vpack.c.bf16 %v354_v24, %v352_v23 }
  0x33   :  { %1987 = vmatprep.subr.bf16.mxu0 %v1986_v26  ;;  %v2006_v26 = vpack.c.bf16 %v483_v17, %v481_v16  ;;  %v357_v28 = vld [vmem:[%s4112_s1 + $0x248] sm:$0xff]  ;;  %v359_v29 = vld [vmem:[%s4112_s1 + $0x258] sm:$0xff]  ;;  %v36_v30 = vld [vmem:[%s4113_s0 + $0x40] sm:$0xff]  ;;  %v2008_v37 = vpack.c.bf16 %v482_v27, %v480_v25 }
  0x34   :  { %v485_v31 = vld [vmem:[%s4112_s1 + $0x648] sm:$0xff]  ;;  %v356_v39 = vld [vmem:[%s4112_s1 + $0x240] sm:$0xff]  ;;  %v358_v40 = vld [vmem:[%s4112_s1 + $0x250] sm:$0xff] }
  0x35   :  { %1861 = vmatpush1.bf16.msra.mxu1 %v1860_v32  ;;  %v487_v32 = vld [vmem:[%s4112_s1 + $0x658] sm:$0xff]  ;;  %v49_v35 = vld [vmem:[%s4113_s0 + $0xa8] sm:$0xff]  ;;  %v484_v41 = vld [vmem:[%s4112_s1 + $0x640] sm:$0xff]  ;;  %v1884_v52 = vpack.c.bf16 %v358_v40, %v356_v39 }
  0x36   :  { %1989 = vmatpush1.bf16.msra.mxu0 %v1988_v33  ;;  %1863 = vmatprep.subr.bf16.mxu1 %v1862_v34  ;;  %v40_v33 = vld [vmem:[%s4113_s0 + $0x60] sm:$0xff]  ;;  %v45_v34 = vld [vmem:[%s4113_s0 + $0x88] sm:$0xff]  ;;  %v2010_v42 = vpack.c.bf16 %v487_v32, %v485_v31  ;;  %v486_v43 = vld [vmem:[%s4112_s1 + $0x650] sm:$0xff] }
  0x37   :  { %1991 = vmatprep.subr.bf16.mxu0 %v1990_v38  ;;  %v1882_v38 = vpack.c.bf16 %v359_v29, %v357_v28  ;;  %v489_v47 = vld [vmem:[%s4112_s1 + $0x668] sm:$0xff]  ;;  %v491_v48 = vld [vmem:[%s4112_s1 + $0x678] sm:$0xff]  ;;  %v48_v49 = vld [vmem:[%s4113_s0 + $0xa0] sm:$0xff]  ;;  %v2012_v53 = vpack.c.bf16 %v486_v43, %v484_v41 }
  0x38   :  { %v57_v51 = vld [vmem:[%s4113_s0 + $0xe8] sm:$0xff]  ;;  %v360_v55 = vld [vmem:[%s4112_s1 + $0x260] sm:$0xff]  ;;  %v490_v59 = vld [vmem:[%s4112_s1 + $0x670] sm:$0xff] }
  0x39   :  { %1865 = vmatpush1.bf16.msra.mxu1 %v1864_v44  ;;  %v361_v44 = vld [vmem:[%s4112_s1 + $0x268] sm:$0xff]  ;;  %v367_v61 = vld [vmem:[%s4112_s1 + $0x298] sm:$0xff]  ;;  %v56_v1 = vld [vmem:[%s4113_s0 + $0xe0] sm:$0xff] }
  0x3a   :  { %1993 = vmatpush1.bf16.msra.mxu0 %v1992_v45  ;;  %1867 = vmatprep.subr.bf16.mxu1 %v1866_v46  ;;  %v363_v45 = vld [vmem:[%s4112_s1 + $0x278] sm:$0xff]  ;;  %v44_v46 = vld [vmem:[%s4113_s0 + $0x80] sm:$0xff]  ;;  %v365_v60 = vld [vmem:[%s4112_s1 + $0x288] sm:$0xff] }
  0x3b   :  { %1995 = vmatprep.subr.bf16.mxu0 %v1994_v50  ;;  %v53_v50 = vld [vmem:[%s4113_s0 + $0xc8] sm:$0xff]  ;;  %v1886_v54 = vpack.c.bf16 %v363_v45, %v361_v44  ;;  %v495_v0 = vld [vmem:[%s4112_s1 + $0x698] sm:$0xff]  ;;  %v364_v7 = vld [vmem:[%s4112_s1 + $0x280] sm:$0xff] }
  0x3c   :  { %v493_v63 = vld [vmem:[%s4112_s1 + $0x688] sm:$0xff]  ;;  %v366_v8 = vld [vmem:[%s4112_s1 + $0x290] sm:$0xff]  ;;  %v371_v13 = vld [vmem:[%s4112_s1 + $0x2b8] sm:$0xff] }
  0x3d   :  { %1869 = vmatpush1.bf16.msra.mxu1 %v1868_v56  ;;  %v362_v56 = vld [vmem:[%s4112_s1 + $0x270] sm:$0xff]  ;;  %v61_v2 = vld [vmem:[%s4113_s0 + $0x108] sm:$0xff]  ;;  %v2018_v10 = vpack.c.bf16 %v495_v0, %v493_v63  ;;  %v499_v16 = vld [vmem:[%s4112_s1 + $0x6b8] sm:$0xff] }
  0x3e   :  { %1997 = vmatpush1.bf16.msra.mxu0 %v1996_v57  ;;  %1871 = vmatprep.subr.bf16.mxu1 %v1870_v58  ;;  %v488_v57 = vld [vmem:[%s4112_s1 + $0x660] sm:$0xff]  ;;  %v2014_v58 = vpack.c.bf16 %v491_v48, %v489_v47  ;;  %v65_v3 = vld [vmem:[%s4113_s0 + $0x128] sm:$0xff]  ;;  %v494_v11 = vld [vmem:[%s4112_s1 + $0x690] sm:$0xff] }
  0x3f   :  { %1999 = vmatprep.subr.bf16.mxu0 %v1998_v62  ;;  %v52_v62 = vld [vmem:[%s4113_s0 + $0xc0] sm:$0xff]  ;;  %v369_v12 = vld [vmem:[%s4112_s1 + $0x2a8] sm:$0xff]  ;;  %v370_v24 = vld [vmem:[%s4112_s1 + $0x2b0] sm:$0xff] }
  0x40   :  { %v64_v17 = vld [vmem:[%s4113_s0 + $0x120] sm:$0xff]  ;;  %v498_v27 = vld [vmem:[%s4112_s1 + $0x6b0] sm:$0xff]  ;;  %v373_v28 = vld [vmem:[%s4112_s1 + $0x2c8] sm:$0xff] }
  0x41   :  { %1873 = vmatpush1.bf16.msra.mxu1 %v1872_v4  ;;  %v1888_v4 = vpack.c.bf16 %v362_v56, %v360_v55  ;;  %v368_v23 = vld [vmem:[%s4112_s1 + $0x2a0] sm:$0xff]  ;;  %v375_v29 = vld [vmem:[%s4112_s1 + $0x2d8] sm:$0xff]  ;;  %v501_v31 = vld [vmem:[%s4112_s1 + $0x6c8] sm:$0xff] }
  0x42   :  { %2001 = vmatpush1.bf16.msra.mxu0 %v2000_v5  ;;  %1875 = vmatprep.subr.bf16.mxu1 %v1874_v6  ;;  %v2016_v5 = vpack.c.bf16 %v490_v59, %v488_v57  ;;  %v1890_v6 = vpack.c.bf16 %v367_v61, %v365_v60  ;;  %v496_v25 = vld [vmem:[%s4112_s1 + $0x6a0] sm:$0xff]  ;;  %v503_v32 = vld [vmem:[%s4112_s1 + $0x6d8] sm:$0xff]  ;;  %v374_v40 = vld [vmem:[%s4112_s1 + $0x2d0] sm:$0xff] }
  0x43   :  { %2003 = vmatprep.subr.bf16.mxu0 %v2002_v9  ;;  %v492_v9 = vld [vmem:[%s4112_s1 + $0x680] sm:$0xff]  ;;  %v502_v43 = vld [vmem:[%s4112_s1 + $0x6d0] sm:$0xff]  ;;  %v377_v44 = vld [vmem:[%s4112_s1 + $0x2e8] sm:$0xff] }
  0x44   :  { %617 = vmatmul.mubr.f32.vlgmr.msra.gmra.mrb[0].mxu1 %v28_v14  ;;  %v60_v14 = vld [vmem:[%s4113_s0 + $0x100] sm:$0xff]  ;;  %v379_v45 = vld [vmem:[%s4112_s1 + $0x2f8] sm:$0xff]  ;;  %v505_v47 = vld [vmem:[%s4112_s1 + $0x6e8] sm:$0xff] }
  0x45   :  { %1131 = vmatmul.mubr.f32.vlgmr.msra.gmra.mrb[0].mxu0 %v32_v18  ;;  %1877 = vmatpush1.bf16.msra.mxu1 %v1876_v15  ;;  %v497_v15 = vld [vmem:[%s4112_s1 + $0x6a8] sm:$0xff]  ;;  %v372_v39 = vld [vmem:[%s4112_s1 + $0x2c0] sm:$0xff]  ;;  %v507_v48 = vld [vmem:[%s4112_s1 + $0x6f8] sm:$0xff] }
  0x46   :  { %622 = vmatprep.mubr.f32.mxu1 %v37_v19  ;;  %1136 = vmatprep.mubr.f32.mxu0 %v41_v20  ;;  %v69_v18 = vld [vmem:[%s4113_s0 + $0x148] sm:$0xff]  ;;  %v1892_v20 = vpack.c.bf16 %v366_v8, %v364_v7  ;;  %v500_v41 = vld [vmem:[%s4112_s1 + $0x6c0] sm:$0xff]  ;;  %v378_v56 = vld [vmem:[%s4112_s1 + $0x2f0] sm:$0xff] }
  0x47   :  { %2005 = vmatpush1.bf16.msra.mxu0 %v2004_v21  ;;  %1879 = vmatprep.subr.bf16.mxu1 %v1878_v22  ;;  %v73_v19 = vld [vmem:[%s4113_s0 + $0x168] sm:$0xff]  ;;  %v2020_v21 = vpack.c.bf16 %v494_v11, %v492_v9  ;;  %v1894_v22 = vpack.c.bf16 %v371_v13, %v369_v12  ;;  %v376_v55 = vld [vmem:[%s4112_s1 + $0x2e0] sm:$0xff]  ;;  %v506_v59 = vld [vmem:[%s4112_s1 + $0x6f0] sm:$0xff] }
  0x48   :  { %623 = vmatmul.mubr.f32.gmra.mrb[2].mxu1 %v36_v30  ;;  %2007 = vmatprep.subr.bf16.mxu0 %v2006_v26  ;;  %v2022_v26 = vpack.c.bf16 %v499_v16, %v497_v15  ;;  %v68_v30 = vld [vmem:[%s4113_s0 + $0x140] sm:$0xff]  ;;  %v381_v60 = vld [vmem:[%s4112_s1 + $0x308] sm:$0xff]  ;;  %v383_v61 = vld [vmem:[%s4112_s1 + $0x318] sm:$0xff] }
  0x49   :  { %1137 = vmatmul.mubr.f32.gmra.mrb[2].mxu0 %v40_v33  ;;  %628 = vmatprep.mubr.f32.mxu1 %v45_v34  ;;  %v72_v33 = vld [vmem:[%s4113_s0 + $0x160] sm:$0xff]  ;;  %v77_v34 = vld [vmem:[%s4113_s0 + $0x188] sm:$0xff]  ;;  %v511_v0 = vld [vmem:[%s4112_s1 + $0x718] sm:$0xff] }
  0x4a   :  { %1142 = vmatprep.mubr.f32.mxu0 %v49_v35  ;;  %1881 = vmatpush1.bf16.msra.mxu1 %v1880_v36  ;;  %v81_v35 = vld [vmem:[%s4113_s0 + $0x1a8] sm:$0xff]  ;;  %v1896_v36 = vpack.c.bf16 %v370_v24, %v368_v23  ;;  %v504_v57 = vld [vmem:[%s4112_s1 + $0x6e0] sm:$0xff]  ;;  %v382_v8 = vld [vmem:[%s4112_s1 + $0x310] sm:$0xff] }
  0x4b   :  { %2009 = vmatpush1.bf16.msra.mxu0 %v2008_v37  ;;  %1883 = vmatprep.subr.bf16.mxu1 %v1882_v38  ;;  %v2024_v37 = vpack.c.bf16 %v498_v27, %v496_v25  ;;  %v1898_v38 = vpack.c.bf16 %v375_v29, %v373_v28  ;;  %v509_v63 = vld [vmem:[%s4112_s1 + $0x708] sm:$0xff]  ;;  %v380_v7 = vld [vmem:[%s4112_s1 + $0x300] sm:$0xff]  ;;  %v510_v11 = vld [vmem:[%s4112_s1 + $0x710] sm:$0xff] }
  0x4c   :  { %629 = vmatmul.mubr.f32.gmra.mrb[4].mxu1 %v44_v46  ;;  %2011 = vmatprep.subr.bf16.mxu0 %v2010_v42  ;;  %v2026_v42 = vpack.c.bf16 %v503_v32, %v501_v31  ;;  %v76_v46 = vld [vmem:[%s4113_s0 + $0x180] sm:$0xff]  ;;  %v385_v12 = vld [vmem:[%s4112_s1 + $0x328] sm:$0xff]  ;;  %v387_v13 = vld [vmem:[%s4112_s1 + $0x338] sm:$0xff] }
  0x4d   :  { %1143 = vmatmul.mubr.f32.gmra.mrb[4].mxu0 %v48_v49  ;;  %634 = vmatprep.mubr.f32.mxu1 %v53_v50  ;;  %v80_v49 = vld [vmem:[%s4113_s0 + $0x1a0] sm:$0xff]  ;;  %v85_v50 = vld [vmem:[%s4113_s0 + $0x1c8] sm:$0xff]  ;;  %v515_v16 = vld [vmem:[%s4112_s1 + $0x738] sm:$0xff] }
  0x4e   :  { %1148 = vmatprep.mubr.f32.mxu0 %v57_v51  ;;  %1885 = vmatpush1.bf16.msra.mxu1 %v1884_v52  ;;  %v89_v51 = vld [vmem:[%s4113_s0 + $0x1e8] sm:$0xff]  ;;  %v1900_v52 = vpack.c.bf16 %v374_v40, %v372_v39  ;;  %v508_v9 = vld [vmem:[%s4112_s1 + $0x700] sm:$0xff]  ;;  %v386_v24 = vld [vmem:[%s4112_s1 + $0x330] sm:$0xff] }
  0x4f   :  { %2013 = vmatpush1.bf16.msra.mxu0 %v2012_v53  ;;  %1887 = vmatprep.subr.bf16.mxu1 %v1886_v54  ;;  %v2028_v53 = vpack.c.bf16 %v502_v43, %v500_v41  ;;  %v1902_v54 = vpack.c.bf16 %v379_v45, %v377_v44  ;;  %v513_v15 = vld [vmem:[%s4112_s1 + $0x728] sm:$0xff]  ;;  %v384_v23 = vld [vmem:[%s4112_s1 + $0x320] sm:$0xff]  ;;  %v514_v27 = vld [vmem:[%s4112_s1 + $0x730] sm:$0xff] }
  0x50   :  { %635 = vmatmul.mubr.f32.gmra.mrb[6].mxu1 %v52_v62  ;;  %2015 = vmatprep.subr.bf16.mxu0 %v2014_v58  ;;  %v2030_v58 = vpack.c.bf16 %v507_v48, %v505_v47  ;;  %v84_v62 = vld [vmem:[%s4113_s0 + $0x1c0] sm:$0xff]  ;;  %v389_v28 = vld [vmem:[%s4112_s1 + $0x348] sm:$0xff]  ;;  %v391_v29 = vld [vmem:[%s4112_s1 + $0x358] sm:$0xff] }
  0x51   :  { %1149 = vmatmul.mubr.f32.gmra.mrb[6].mxu0 %v56_v1  ;;  %640 = vmatprep.mubr.f32.mxu1 %v61_v2  ;;  %v88_v1 = vld [vmem:[%s4113_s0 + $0x1e0] sm:$0xff]  ;;  %v93_v2 = vld [vmem:[%s4113_s0 + $0x208] sm:$0xff]  ;;  %v519_v32 = vld [vmem:[%s4112_s1 + $0x758] sm:$0xff] }
  0x52   :  { %1154 = vmatprep.mubr.f32.mxu0 %v65_v3  ;;  %1889 = vmatpush1.bf16.msra.mxu1 %v1888_v4  ;;  %v97_v3 = vld [vmem:[%s4113_s0 + $0x228] sm:$0xff]  ;;  %v1904_v4 = vpack.c.bf16 %v378_v56, %v376_v55  ;;  %v512_v25 = vld [vmem:[%s4112_s1 + $0x720] sm:$0xff]  ;;  %v390_v40 = vld [vmem:[%s4112_s1 + $0x350] sm:$0xff] }
  0x53   :  { %2017 = vmatpush1.bf16.msra.mxu0 %v2016_v5  ;;  %1891 = vmatprep.subr.bf16.mxu1 %v1890_v6  ;;  %v2032_v5 = vpack.c.bf16 %v506_v59, %v504_v57  ;;  %v1906_v6 = vpack.c.bf16 %v383_v61, %v381_v60  ;;  %v517_v31 = vld [vmem:[%s4112_s1 + $0x748] sm:$0xff]  ;;  %v388_v39 = vld [vmem:[%s4112_s1 + $0x340] sm:$0xff]  ;;  %v518_v43 = vld [vmem:[%s4112_s1 + $0x750] sm:$0xff] }
  0x54   :  { %641 = vmatmul.mubr.f32.gmra.mrb[8].mxu1 %v60_v14  ;;  %2019 = vmatprep.subr.bf16.mxu0 %v2018_v10  ;;  %v2034_v10 = vpack.c.bf16 %v511_v0, %v509_v63  ;;  %v92_v14 = vld [vmem:[%s4113_s0 + $0x200] sm:$0xff]  ;;  %v393_v44 = vld [vmem:[%s4112_s1 + $0x368] sm:$0xff]  ;;  %v395_v45 = vld [vmem:[%s4112_s1 + $0x378] sm:$0xff] }
  0x55   :  { %1155 = vmatmul.mubr.f32.gmra.mrb[8].mxu0 %v64_v17  ;;  %646 = vmatprep.mubr.f32.mxu1 %v69_v18  ;;  %v96_v17 = vld [vmem:[%s4113_s0 + $0x220] sm:$0xff]  ;;  %v101_v18 = vld [vmem:[%s4113_s0 + $0x248] sm:$0xff]  ;;  %v523_v48 = vld [vmem:[%s4112_s1 + $0x778] sm:$0xff] }
  0x56   :  { %1160 = vmatprep.mubr.f32.mxu0 %v73_v19  ;;  %1893 = vmatpush1.bf16.msra.mxu1 %v1892_v20  ;;  %v105_v19 = vld [vmem:[%s4113_s0 + $0x268] sm:$0xff]  ;;  %v1908_v20 = vpack.c.bf16 %v382_v8, %v380_v7  ;;  %v516_v41 = vld [vmem:[%s4112_s1 + $0x740] sm:$0xff]  ;;  %v394_v56 = vld [vmem:[%s4112_s1 + $0x370] sm:$0xff] }
  0x57   :  { %2021 = vmatpush1.bf16.msra.mxu0 %v2020_v21  ;;  %1895 = vmatprep.subr.bf16.mxu1 %v1894_v22  ;;  %v2036_v21 = vpack.c.bf16 %v510_v11, %v508_v9  ;;  %v1910_v22 = vpack.c.bf16 %v387_v13, %v385_v12  ;;  %v521_v47 = vld [vmem:[%s4112_s1 + $0x768] sm:$0xff]  ;;  %v392_v55 = vld [vmem:[%s4112_s1 + $0x360] sm:$0xff]  ;;  %v522_v59 = vld [vmem:[%s4112_s1 + $0x770] sm:$0xff] }
  0x58   :  { %647 = vmatmul.mubr.f32.gmra.mrb[10].mxu1 %v68_v30  ;;  %2023 = vmatprep.subr.bf16.mxu0 %v2022_v26  ;;  %v2038_v26 = vpack.c.bf16 %v515_v16, %v513_v15  ;;  %v100_v30 = vld [vmem:[%s4113_s0 + $0x240] sm:$0xff]  ;;  %v2046_v57 = vpack.c.bf16 %v523_v48, %v521_v47  ;;  %v397_v60 = vld [vmem:[%s4112_s1 + $0x388] sm:$0xff]  ;;  %v399_v63 = vld [vmem:[%s4112_s1 + $0x398] sm:$0xff] }
  0x59   :  { %1161 = vmatmul.mubr.f32.gmra.mrb[10].mxu0 %v72_v33  ;;  %652 = vmatprep.mubr.f32.mxu1 %v77_v34  ;;  %v104_v33 = vld [vmem:[%s4113_s0 + $0x260] sm:$0xff]  ;;  %v109_v34 = vld [vmem:[%s4113_s0 + $0x288] sm:$0xff]  ;;  %v398_v8 = vld [vmem:[%s4112_s1 + $0x390] sm:$0xff] }
  0x5a   :  { %1166 = vmatprep.mubr.f32.mxu0 %v81_v35  ;;  %1897 = vmatpush1.bf16.msra.mxu1 %v1896_v36  ;;  %v113_v35 = vld [vmem:[%s4113_s0 + $0x2a8] sm:$0xff]  ;;  %v1912_v36 = vpack.c.bf16 %v386_v24, %v384_v23  ;;  %v116_v61 = vld [vmem:[%s4113_s0 + $0x2c0] sm:$0xff]  ;;  %v526_v11 = vld [vmem:[%s4112_s1 + $0x790] sm:$0xff] }
  0x5b   :  { %2025 = vmatpush1.bf16.msra.mxu0 %v2024_v37  ;;  %1899 = vmatprep.subr.bf16.mxu1 %v1898_v38  ;;  %v2040_v37 = vpack.c.bf16 %v514_v27, %v512_v25  ;;  %v1914_v38 = vpack.c.bf16 %v391_v29, %v389_v28  ;;  %v125_v0 = vld [vmem:[%s4113_s0 + $0x308] sm:$0xff]  ;;  %v396_v7 = vld [vmem:[%s4112_s1 + $0x380] sm:$0xff]  ;;  %v531_v24 = vld [vmem:[%s4112_s1 + $0x7b8] sm:$0xff] }
  0x5c   :  { %653 = vmatmul.mubr.f32.gmra.mrb[12].mxu1 %v76_v46  ;;  %2027 = vmatprep.subr.bf16.mxu0 %v2026_v42  ;;  %v2042_v42 = vpack.c.bf16 %v519_v32, %v517_v31  ;;  %v108_v46 = vld [vmem:[%s4113_s0 + $0x280] sm:$0xff]  ;;  %v137_v15 = vld [vmem:[%s4113_s0 + $0x368] sm:$0xff]  ;;  %v1924_v16 = vpack.c.bf16 %v398_v8, %v396_v7  ;;  %v530_v28 = vld [vmem:[%s4112_s1 + $0x7b0] sm:$0xff] }
  0x5d   :  { %1167 = vmatmul.mubr.f32.gmra.mrb[12].mxu0 %v80_v49  ;;  %658 = vmatprep.mubr.f32.mxu1 %v85_v50  ;;  %v112_v49 = vld [vmem:[%s4113_s0 + $0x2a0] sm:$0xff]  ;;  %v117_v50 = vld [vmem:[%s4113_s0 + $0x2c8] sm:$0xff]  ;;  %v534_v47 = vld [vmem:[%s4112_s1 + $0x7d0] sm:$0xff] }
  0x5e   :  { %1172 = vmatprep.mubr.f32.mxu0 %v89_v51  ;;  %1901 = vmatpush1.bf16.msra.mxu1 %v1900_v52  ;;  %v1916_v51 = vpack.c.bf16 %v390_v40, %v388_v39  ;;  %v121_v52 = vld [vmem:[%s4113_s0 + $0x2e8] sm:$0xff]  ;;  %v124_v12 = vld [vmem:[%s4113_s0 + $0x300] sm:$0xff]  ;;  %v406_v39 = vld [vmem:[%s4112_s1 + $0x3d0] sm:$0xff] }
  0x5f   :  { %2029 = vmatpush1.bf16.msra.mxu0 %v2028_v53  ;;  %1903 = vmatprep.subr.bf16.mxu1 %v1902_v54  ;;  %v2044_v53 = vpack.c.bf16 %v518_v43, %v516_v41  ;;  %v1918_v54 = vpack.c.bf16 %v395_v45, %v393_v44  ;;  %v128_v13 = vld [vmem:[%s4113_s0 + $0x320] sm:$0xff]  ;;  %v529_v23 = vld [vmem:[%s4112_s1 + $0x7a8] sm:$0xff] }
  0x60   :  { %659 = vmatmul.mubr.f32.gmra.mrb[14].mxu1 %v84_v62  ;;  %2031 = vmatprep.subr.bf16.mxu0 %v2030_v58  ;;  %v520_v58 = vld [vmem:[%s4112_s1 + $0x760] sm:$0xff]  ;;  %v145_v32 = vld [vmem:[%s4113_s0 + $0x3a8] sm:$0xff] }
  0x61   :  { %1173 = vmatmul.mubr.f32.gmra.mrb[14].mxu0 %v88_v1  ;;  %664 = vmatprep.mubr.f32.mxu1 %v93_v2  ;;  %v120_v62 = vld [vmem:[%s4113_s0 + $0x2e0] sm:$0xff]  ;;  %v1920_v1 = vpack.c.bf16 %v394_v56, %v392_v55  ;;  %v525_v2 = vld [vmem:[%s4112_s1 + $0x788] sm:$0xff] }
  0x62   :  { %1178 = vmatprep.mubr.f32.mxu0 %v97_v3  ;;  %1905 = vmatpush1.bf16.msra.mxu1 %v1904_v4  ;;  %v527_v3 = vld [vmem:[%s4112_s1 + $0x798] sm:$0xff]  ;;  %v129_v4 = vld [vmem:[%s4113_s0 + $0x328] sm:$0xff]  ;;  %v132_v25 = vld [vmem:[%s4113_s0 + $0x340] sm:$0xff] }
  0x63   :  { %2033 = vmatpush1.bf16.msra.mxu0 %v2032_v5  ;;  %1907 = vmatprep.subr.bf16.mxu1 %v1906_v6  ;;  %v2048_v5 = vpack.c.bf16 %v522_v59, %v520_v58  ;;  %v1922_v6 = vpack.c.bf16 %v399_v63, %v397_v60  ;;  %v2050_v9 = vpack.c.bf16 %v527_v3, %v525_v2  ;;  %v528_v27 = vld [vmem:[%s4112_s1 + $0x7a0] sm:$0xff]  ;;  %v533_v41 = vld [vmem:[%s4112_s1 + $0x7c8] sm:$0xff]  ;;  %v539_v59 = vld [vmem:[%s4112_s1 + $0x7f8] sm:$0xff] }
  0x64   :  { %665 = vmatmul.mubr.f32.gmra.mrb[16].mxu1 %v92_v14  ;;  %2035 = vmatprep.subr.bf16.mxu0 %v2034_v10  ;;  %v524_v10 = vld [vmem:[%s4112_s1 + $0x780] sm:$0xff]  ;;  %v133_v14 = vld [vmem:[%s4113_s0 + $0x348] sm:$0xff] }
  0x65   :  { %1179 = vmatmul.mubr.f32.gmra.mrb[16].mxu0 %v96_v17  ;;  %670 = vmatprep.mubr.f32.mxu1 %v101_v18  ;;  %v401_v17 = vld [vmem:[%s4112_s1 + $0x3a8] sm:$0xff]  ;;  %v403_v18 = vld [vmem:[%s4112_s1 + $0x3b8] sm:$0xff]  ;;  %v136_v29 = vld [vmem:[%s4113_s0 + $0x360] sm:$0xff] }
  0x66   :  { %1184 = vmatprep.mubr.f32.mxu0 %v105_v19  ;;  %1909 = vmatpush1.bf16.msra.mxu1 %v1908_v20  ;;  %v2052_v19 = vpack.c.bf16 %v526_v11, %v524_v10  ;;  %v1926_v20 = vpack.c.bf16 %v403_v18, %v401_v17  ;;  %v144_v40 = vld [vmem:[%s4113_s0 + $0x3a0] sm:$0xff]  ;;  %v149_v43 = vld [vmem:[%s4113_s0 + $0x3c8] sm:$0xff] }
  0x67   :  { %2037 = vmatpush1.bf16.msra.mxu0 %v2036_v21  ;;  %1911 = vmatprep.subr.bf16.mxu1 %v1910_v22  ;;  %v400_v21 = vld [vmem:[%s4112_s1 + $0x3a0] sm:$0xff]  ;;  %v402_v22 = vld [vmem:[%s4112_s1 + $0x3b0] sm:$0xff]  ;;  %v153_v48 = vld [vmem:[%s4113_s0 + $0x3e8] sm:$0xff] }
  0x68   :  { %671 = vmatmul.mubr.f32.gmra.mrb[18].mxu1 %v100_v30  ;;  %2039 = vmatprep.subr.bf16.mxu0 %v2038_v26  ;;  %v2054_v26 = vpack.c.bf16 %v531_v24, %v529_v23  ;;  %v141_v30 = vld [vmem:[%s4113_s0 + $0x388] sm:$0xff]  ;;  %v1928_v31 = vpack.c.bf16 %v402_v22, %v400_v21  ;;  %v408_v55 = vld [vmem:[%s4112_s1 + $0x3e0] sm:$0xff] }
  0x69   :  { %1185 = vmatmul.mubr.f32.gmra.mrb[18].mxu0 %v104_v33  ;;  %676 = vmatprep.mubr.f32.mxu1 %v109_v34  ;;  %v2056_v33 = vpack.c.bf16 %v530_v28, %v528_v27  ;;  %v405_v34 = vld [vmem:[%s4112_s1 + $0x3c8] sm:$0xff]  ;;  %v536_v63 = vld [vmem:[%s4112_s1 + $0x7e0] sm:$0xff] }
  0x6a   :  { %1190 = vmatprep.mubr.f32.mxu0 %v113_v35  ;;  %1913 = vmatpush1.bf16.msra.mxu1 %v1912_v36  ;;  %v407_v35 = vld [vmem:[%s4112_s1 + $0x3d8] sm:$0xff]  ;;  %v140_v36 = vld [vmem:[%s4113_s0 + $0x380] sm:$0xff]  ;;  %v537_v58 = vld [vmem:[%s4112_s1 + $0x7e8] sm:$0xff] }
  0x6b   :  { %2041 = vmatpush1.bf16.msra.mxu0 %v2040_v37  ;;  %1915 = vmatprep.subr.bf16.mxu1 %v1914_v38  ;;  %v1930_v37 = vpack.c.bf16 %v407_v35, %v405_v34  ;;  %v404_v38 = vld [vmem:[%s4112_s1 + $0x3c0] sm:$0xff]  ;;  %v161_v60 = vld [vmem:[%s4113_s0 + $0x428] sm:$0xff] }
  0x6c   :  { %677 = vmatmul.mubr.f32.gmra.mrb[20].mxu1 %v108_v46  ;;  %2043 = vmatprep.subr.bf16.mxu0 %v2042_v42  ;;  %v535_v42 = vld [vmem:[%s4112_s1 + $0x7d8] sm:$0xff]  ;;  %v1932_v44 = vpack.c.bf16 %v406_v39, %v404_v38  ;;  %v532_v46 = vld [vmem:[%s4112_s1 + $0x7c0] sm:$0xff]  ;;  %v173_v8 = vld [vmem:[%s4113_s0 + $0x488] sm:$0xff] }
  0x6d   :  { %1191 = vmatmul.mubr.f32.gmra.mrb[20].mxu0 %v112_v49  ;;  %682 = vmatprep.mubr.f32.mxu1 %v117_v50  ;;  %v2058_v45 = vpack.c.bf16 %v535_v42, %v533_v41  ;;  %v2060_v49 = vpack.c.bf16 %v534_v47, %v532_v46  ;;  %v148_v50 = vld [vmem:[%s4113_s0 + $0x3c0] sm:$0xff]  ;;  %v193_v17 = vld [vmem:[%s4113_s0 + $0x528] sm:$0xff] }
  0x6e   :  { %1196 = vmatprep.mubr.f32.mxu0 %v121_v52  ;;  %1917 = vmatpush1.bf16.msra.mxu1 %v1916_v51  ;;  %v152_v51 = vld [vmem:[%s4113_s0 + $0x3e0] sm:$0xff]  ;;  %v409_v52 = vld [vmem:[%s4112_s1 + $0x3e8] sm:$0xff] }
  0x6f   :  { %2045 = vmatpush1.bf16.msra.mxu0 %v2044_v53  ;;  %1919 = vmatprep.subr.bf16.mxu1 %v1918_v54  ;;  %v157_v53 = vld [vmem:[%s4113_s0 + $0x408] sm:$0xff]  ;;  %v411_v54 = vld [vmem:[%s4112_s1 + $0x3f8] sm:$0xff]  ;;  %v160_v3 = vld [vmem:[%s4113_s0 + $0x420] sm:$0xff] }
  0x70   :  { %683 = vmatmul.mubr.f32.gmra.mrb[22].mxu1 %v116_v61  ;;  %2047 = vmatprep.subr.bf16.mxu0 %v2046_v57  ;;  %v1934_v56 = vpack.c.bf16 %v411_v54, %v409_v52  ;;  %v410_v57 = vld [vmem:[%s4112_s1 + $0x3f0] sm:$0xff]  ;;  %v168_v7 = vld [vmem:[%s4113_s0 + $0x460] sm:$0xff]  ;;  %v201_v21 = vld [vmem:[%s4113_s0 + $0x568] sm:$0xff] }
  0x71   :  { %1197 = vmatmul.mubr.f32.gmra.mrb[22].mxu0 %v120_v62  ;;  %688 = vmatprep.mubr.f32.mxu1 %v125_v0  ;;  %v1936_v61 = vpack.c.bf16 %v410_v57, %v408_v55  ;;  %v2062_v62 = vpack.c.bf16 %v539_v59, %v537_v58  ;;  %v538_v0 = vld [vmem:[%s4112_s1 + $0x7f0] sm:$0xff]  ;;  %v172_v10 = vld [vmem:[%s4113_s0 + $0x480] sm:$0xff]  ;;  %v205_v24 = vld [vmem:[%s4113_s0 + $0x588] sm:$0xff] }
  0x72   :  { %1202 = vmatprep.mubr.f32.mxu0 %v129_v4  ;;  %1921 = vmatpush1.bf16.msra.mxu1 %v1920_v1  ;;  %v156_v1 = vld [vmem:[%s4113_s0 + $0x400] sm:$0xff]  ;;  %v2064_v2 = vpack.c.bf16 %v538_v0, %v536_v63  ;;  %v165_v4 = vld [vmem:[%s4113_s0 + $0x448] sm:$0xff]  ;;  %v31_v0 = vld [vmem:[%s4113_s0 + $0x18] sm:$0xff] }
  0x73   :  { %2049 = vmatpush1.bf16.msra.mxu0 %v2048_v5  ;;  %1923 = vmatprep.subr.bf16.mxu1 %v1922_v6  ;;  %v169_v5 = vld [vmem:[%s4113_s0 + $0x468] sm:$0xff]  ;;  %v164_v6 = vld [vmem:[%s4113_s0 + $0x440] sm:$0xff] }
  0x74   :  { %689 = vmatmul.mubr.f32.gmra.mrb[24].mxu1 %v124_v12  ;;  %2051 = vmatprep.subr.bf16.mxu0 %v2050_v9  ;;  %v177_v9 = vld [vmem:[%s4113_s0 + $0x4a8] sm:$0xff]  ;;  %v176_v11 = vld [vmem:[%s4113_s0 + $0x4a0] sm:$0xff] }
  0x75   :  { %1203 = vmatmul.mubr.f32.gmra.mrb[24].mxu0 %v128_v13  ;;  %694 = vmatprep.mubr.f32.mxu1 %v133_v14  ;;  %v181_v12 = vld [vmem:[%s4113_s0 + $0x4c8] sm:$0xff]  ;;  %v180_v14 = vld [vmem:[%s4113_s0 + $0x4c0] sm:$0xff] }
  0x76   :  { %1208 = vmatprep.mubr.f32.mxu0 %v137_v15  ;;  %1925 = vmatpush1.bf16.msra.mxu1 %v1924_v16  ;;  %v185_v13 = vld [vmem:[%s4113_s0 + $0x4e8] sm:$0xff]  ;;  %v184_v15 = vld [vmem:[%s4113_s0 + $0x4e0] sm:$0xff] }
  0x77   :  { %2053 = vmatpush1.bf16.msra.mxu0 %v2052_v19  ;;  %1927 = vmatprep.subr.bf16.mxu1 %v1926_v20  ;;  %v189_v16 = vld [vmem:[%s4113_s0 + $0x508] sm:$0xff]  ;;  %v188_v18 = vld [vmem:[%s4113_s0 + $0x500] sm:$0xff] }
  0x78   :  { %695 = vmatmul.mubr.f32.gmra.mrb[26].mxu1 %v132_v25  ;;  %2055 = vmatprep.subr.bf16.mxu0 %v2054_v26  ;;  %v192_v19 = vld [vmem:[%s4113_s0 + $0x520] sm:$0xff]  ;;  %v197_v20 = vld [vmem:[%s4113_s0 + $0x548] sm:$0xff] }
  0x79   :  { %1209 = vmatmul.mubr.f32.gmra.mrb[26].mxu0 %v136_v29  ;;  %700 = vmatprep.mubr.f32.mxu1 %v141_v30  ;;  %v196_v22 = vld [vmem:[%s4113_s0 + $0x540] sm:$0xff]  ;;  %v209_v25 = vld [vmem:[%s4113_s0 + $0x5a8] sm:$0xff] }
  0x7a   :  { %1214 = vmatprep.mubr.f32.mxu0 %v145_v32  ;;  %1929 = vmatpush1.bf16.msra.mxu1 %v1928_v31  ;;  %v200_v23 = vld [vmem:[%s4113_s0 + $0x560] sm:$0xff]  ;;  %v213_v28 = vld [vmem:[%s4113_s0 + $0x5c8] sm:$0xff] }
  0x7b   :  { %2057 = vmatpush1.bf16.msra.mxu0 %v2056_v33  ;;  %1931 = vmatprep.subr.bf16.mxu1 %v1930_v37  ;;  %v204_v26 = vld [vmem:[%s4113_s0 + $0x580] sm:$0xff]  ;;  %v217_v29 = vld [vmem:[%s4113_s0 + $0x5e8] sm:$0xff] }
  0x7c   :  { %701 = vmatmul.mubr.f32.gmra.mrb[28].mxu1 %v140_v36  ;;  %2059 = vmatprep.subr.bf16.mxu0 %v2058_v45  ;;  %v208_v27 = vld [vmem:[%s4113_s0 + $0x5a0] sm:$0xff]  ;;  %v221_v32 = vld [vmem:[%s4113_s0 + $0x608] sm:$0xff] }
  0x7d   :  { %1215 = vmatmul.mubr.f32.gmra.mrb[28].mxu0 %v144_v40  ;;  %706 = vmatprep.mubr.f32.mxu1 %v149_v43  ;;  %v212_v30 = vld [vmem:[%s4113_s0 + $0x5c0] sm:$0xff]  ;;  %v225_v33 = vld [vmem:[%s4113_s0 + $0x628] sm:$0xff] }
  0x7e   :  { %1220 = vmatprep.mubr.f32.mxu0 %v153_v48  ;;  %1933 = vmatpush1.bf16.msra.mxu1 %v1932_v44  ;;  %v216_v31 = vld [vmem:[%s4113_s0 + $0x5e0] sm:$0xff]  ;;  %v229_v36 = vld [vmem:[%s4113_s0 + $0x648] sm:$0xff] }
  0x7f   :  { %2061 = vmatpush1.bf16.msra.mxu0 %v2060_v49  ;;  %1935 = vmatprep.subr.bf16.mxu1 %v1934_v56  ;;  %v220_v34 = vld [vmem:[%s4113_s0 + $0x600] sm:$0xff]  ;;  %v233_v37 = vld [vmem:[%s4113_s0 + $0x668] sm:$0xff] }
  0x80   :  { %707 = vmatmul.mubr.f32.gmra.mrb[30].mxu1 %v148_v50  ;;  %2063 = vmatprep.subr.bf16.mxu0 %v2062_v62  ;;  %v224_v35 = vld [vmem:[%s4113_s0 + $0x620] sm:$0xff]  ;;  %v237_v40 = vld [vmem:[%s4113_s0 + $0x688] sm:$0xff] }
  0x81   :  { %1221 = vmatmul.mubr.f32.gmra.mrb[30].mxu0 %v152_v51  ;;  %712 = vmatprep.mubr.f32.mxu1 %v157_v53  ;;  %v228_v38 = vld [vmem:[%s4113_s0 + $0x640] sm:$0xff]  ;;  %v241_v41 = vld [vmem:[%s4113_s0 + $0x6a8] sm:$0xff] }
  0x82   :  { %1226 = vmatprep.mubr.f32.mxu0 %v161_v60  ;;  %1937 = vmatpush1.bf16.msra.mxu1 %v1936_v61  ;;  %v232_v39 = vld [vmem:[%s4113_s0 + $0x660] sm:$0xff]  ;;  %v245_v44 = vld [vmem:[%s4113_s0 + $0x6c8] sm:$0xff] }
  0x83   :  { %2065 = vmatpush1.bf16.msra.mxu0 %v2064_v2  ;;  %v236_v42 = vld [vmem:[%s4113_s0 + $0x680] sm:$0xff]  ;;  %v249_v45 = vld [vmem:[%s4113_s0 + $0x6e8] sm:$0xff]  ;;  %v30_v2 = vld [vmem:[%s4113_s0 + $0x10] sm:$0xff] }
  0x84   :  { %713 = vmatmul.mubr.f32.gmra.mrb[32].mxu1 %v156_v1  ;;  %v240_v43 = vld [vmem:[%s4113_s0 + $0x6a0] sm:$0xff]  ;;  %v253_v48 = vld [vmem:[%s4113_s0 + $0x708] sm:$0xff]  ;;  %v35_v1 = vld [vmem:[%s4113_s0 + $0x38] sm:$0xff] }
  0x85   :  { %1227 = vmatmul.mubr.f32.gmra.mrb[32].mxu0 %v160_v3  ;;  %718 = vmatprep.mubr.f32.mxu1 %v165_v4  ;;  %v244_v46 = vld [vmem:[%s4113_s0 + $0x6c0] sm:$0xff]  ;;  %v257_v49 = vld [vmem:[%s4113_s0 + $0x728] sm:$0xff]  ;;  %v34_v3 = vld [vmem:[%s4113_s0 + $0x30] sm:$0xff] }
  0x86   :  { %1232 = vmatprep.mubr.f32.mxu0 %v169_v5  ;;  %v248_v47 = vld [vmem:[%s4113_s0 + $0x6e0] sm:$0xff]  ;;  %v261_v52 = vld [vmem:[%s4113_s0 + $0x748] sm:$0xff]  ;;  %v39_v4 = vld [vmem:[%s4113_s0 + $0x58] sm:$0xff] }
  0x87   :  { %v252_v50 = vld [vmem:[%s4113_s0 + $0x700] sm:$0xff]  ;;  %v265_v53 = vld [vmem:[%s4113_s0 + $0x768] sm:$0xff]  ;;  %v43_v5 = vld [vmem:[%s4113_s0 + $0x78] sm:$0xff] }
  0x88   :  { %719 = vmatmul.mubr.f32.gmra.mrb[34].mxu1 %v164_v6  ;;  %v256_v51 = vld [vmem:[%s4113_s0 + $0x720] sm:$0xff]  ;;  %v269_v56 = vld [vmem:[%s4113_s0 + $0x788] sm:$0xff]  ;;  %v38_v6 = vld [vmem:[%s4113_s0 + $0x50] sm:$0xff] }
  0x89   :  { %1233 = vmatmul.mubr.f32.gmra.mrb[34].mxu0 %v168_v7  ;;  %724 = vmatprep.mubr.f32.mxu1 %v173_v8  ;;  %v260_v54 = vld [vmem:[%s4113_s0 + $0x740] sm:$0xff]  ;;  %v273_v57 = vld [vmem:[%s4113_s0 + $0x7a8] sm:$0xff]  ;;  %v42_v7 = vld [vmem:[%s4113_s0 + $0x70] sm:$0xff] }
  0x8a   :  { %1238 = vmatprep.mubr.f32.mxu0 %v177_v9  ;;  %v264_v55 = vld [vmem:[%s4113_s0 + $0x760] sm:$0xff]  ;;  %v277_v60 = vld [vmem:[%s4113_s0 + $0x7c8] sm:$0xff]  ;;  %v47_v8 = vld [vmem:[%s4113_s0 + $0x98] sm:$0xff] }
  0x8b   :  { %v268_v58 = vld [vmem:[%s4113_s0 + $0x780] sm:$0xff]  ;;  %v281_v61 = vld [vmem:[%s4113_s0 + $0x7e8] sm:$0xff]  ;;  %v51_v9 = vld [vmem:[%s4113_s0 + $0xb8] sm:$0xff] }
  0x8c   :  { %725 = vmatmul.mubr.f32.gmra.mrb[36].mxu1 %v172_v10  ;;  %v272_v59 = vld [vmem:[%s4113_s0 + $0x7a0] sm:$0xff]  ;;  %v46_v10 = vld [vmem:[%s4113_s0 + $0x90] sm:$0xff] }
  0x8d   :  { %1239 = vmatmul.mubr.f32.gmra.mrb[36].mxu0 %v176_v11  ;;  %730 = vmatprep.mubr.f32.mxu1 %v181_v12  ;;  %v276_v62 = vld [vmem:[%s4113_s0 + $0x7c0] sm:$0xff]  ;;  %v50_v11 = vld [vmem:[%s4113_s0 + $0xb0] sm:$0xff]  ;;  %v55_v12 = vld [vmem:[%s4113_s0 + $0xd8] sm:$0xff] }
  0x8e   :  { %1244 = vmatprep.mubr.f32.mxu0 %v185_v13  ;;  %v280_v63 = vld [vmem:[%s4113_s0 + $0x7e0] sm:$0xff]  ;;  %v59_v13 = vld [vmem:[%s4113_s0 + $0xf8] sm:$0xff] }
  0x90   :  { %731 = vmatmul.mubr.f32.gmra.mrb[38].mxu1 %v180_v14  ;;  %v54_v14 = vld [vmem:[%s4113_s0 + $0xd0] sm:$0xff] }
  0x91   :  { %1245 = vmatmul.mubr.f32.gmra.mrb[38].mxu0 %v184_v15  ;;  %736 = vmatprep.mubr.f32.mxu1 %v189_v16  ;;  %v58_v15 = vld [vmem:[%s4113_s0 + $0xf0] sm:$0xff]  ;;  %v63_v16 = vld [vmem:[%s4113_s0 + $0x118] sm:$0xff] }
  0x92   :  { %1250 = vmatprep.mubr.f32.mxu0 %v193_v17  ;;  %v67_v17 = vld [vmem:[%s4113_s0 + $0x138] sm:$0xff] }
  0x94   :  { %737 = vmatmul.mubr.f32.gmra.mrb[40].mxu1 %v188_v18  ;;  %v62_v18 = vld [vmem:[%s4113_s0 + $0x110] sm:$0xff] }
  0x95   :  { %1251 = vmatmul.mubr.f32.gmra.mrb[40].mxu0 %v192_v19  ;;  %742 = vmatprep.mubr.f32.mxu1 %v197_v20  ;;  %v66_v19 = vld [vmem:[%s4113_s0 + $0x130] sm:$0xff]  ;;  %v71_v20 = vld [vmem:[%s4113_s0 + $0x158] sm:$0xff] }
  0x96   :  { %1256 = vmatprep.mubr.f32.mxu0 %v201_v21  ;;  %v75_v21 = vld [vmem:[%s4113_s0 + $0x178] sm:$0xff] }
  0x98   :  { %743 = vmatmul.mubr.f32.gmra.mrb[42].mxu1 %v196_v22  ;;  %v70_v22 = vld [vmem:[%s4113_s0 + $0x150] sm:$0xff] }
  0x99   :  { %1257 = vmatmul.mubr.f32.gmra.mrb[42].mxu0 %v200_v23  ;;  %748 = vmatprep.mubr.f32.mxu1 %v205_v24  ;;  %v74_v23 = vld [vmem:[%s4113_s0 + $0x170] sm:$0xff]  ;;  %v79_v24 = vld [vmem:[%s4113_s0 + $0x198] sm:$0xff] }
  0x9a   :  { %1262 = vmatprep.mubr.f32.mxu0 %v209_v25  ;;  %v83_v25 = vld [vmem:[%s4113_s0 + $0x1b8] sm:$0xff] }
  0x9c   :  { %749 = vmatmul.mubr.f32.gmra.mrb[44].mxu1 %v204_v26  ;;  %v78_v26 = vld [vmem:[%s4113_s0 + $0x190] sm:$0xff] }
  0x9d   :  { %1263 = vmatmul.mubr.f32.gmra.mrb[44].mxu0 %v208_v27  ;;  %754 = vmatprep.mubr.f32.mxu1 %v213_v28  ;;  %v82_v27 = vld [vmem:[%s4113_s0 + $0x1b0] sm:$0xff]  ;;  %v87_v28 = vld [vmem:[%s4113_s0 + $0x1d8] sm:$0xff] }
  0x9e   :  { %1268 = vmatprep.mubr.f32.mxu0 %v217_v29  ;;  %v91_v29 = vld [vmem:[%s4113_s0 + $0x1f8] sm:$0xff] }
  0xa0   :  { %755 = vmatmul.mubr.f32.gmra.mrb[46].mxu1 %v212_v30  ;;  %v86_v30 = vld [vmem:[%s4113_s0 + $0x1d0] sm:$0xff] }
  0xa1   :  { %1269 = vmatmul.mubr.f32.gmra.mrb[46].mxu0 %v216_v31  ;;  %760 = vmatprep.mubr.f32.mxu1 %v221_v32  ;;  %v90_v31 = vld [vmem:[%s4113_s0 + $0x1f0] sm:$0xff]  ;;  %v95_v32 = vld [vmem:[%s4113_s0 + $0x218] sm:$0xff] }
  0xa2   :  { %1274 = vmatprep.mubr.f32.mxu0 %v225_v33  ;;  %v99_v33 = vld [vmem:[%s4113_s0 + $0x238] sm:$0xff] }
  0xa4   :  { %761 = vmatmul.mubr.f32.gmra.mrb[48].mxu1 %v220_v34  ;;  %v94_v34 = vld [vmem:[%s4113_s0 + $0x210] sm:$0xff] }
  0xa5   :  { %1275 = vmatmul.mubr.f32.gmra.mrb[48].mxu0 %v224_v35  ;;  %766 = vmatprep.mubr.f32.mxu1 %v229_v36  ;;  %v98_v35 = vld [vmem:[%s4113_s0 + $0x230] sm:$0xff]  ;;  %v103_v36 = vld [vmem:[%s4113_s0 + $0x258] sm:$0xff] }
  0xa6   :  { %1280 = vmatprep.mubr.f32.mxu0 %v233_v37  ;;  %v107_v37 = vld [vmem:[%s4113_s0 + $0x278] sm:$0xff] }
  0xa8   :  { %767 = vmatmul.mubr.f32.gmra.mrb[50].mxu1 %v228_v38  ;;  %v102_v38 = vld [vmem:[%s4113_s0 + $0x250] sm:$0xff] }
  0xa9   :  { %1281 = vmatmul.mubr.f32.gmra.mrb[50].mxu0 %v232_v39  ;;  %772 = vmatprep.mubr.f32.mxu1 %v237_v40  ;;  %v106_v39 = vld [vmem:[%s4113_s0 + $0x270] sm:$0xff]  ;;  %v111_v40 = vld [vmem:[%s4113_s0 + $0x298] sm:$0xff] }
  0xaa   :  { %1286 = vmatprep.mubr.f32.mxu0 %v241_v41  ;;  %v115_v41 = vld [vmem:[%s4113_s0 + $0x2b8] sm:$0xff] }
  0xac   :  { %773 = vmatmul.mubr.f32.gmra.mrb[52].mxu1 %v236_v42  ;;  %v110_v42 = vld [vmem:[%s4113_s0 + $0x290] sm:$0xff] }
  0xad   :  { %1287 = vmatmul.mubr.f32.gmra.mrb[52].mxu0 %v240_v43  ;;  %778 = vmatprep.mubr.f32.mxu1 %v245_v44  ;;  %v114_v43 = vld [vmem:[%s4113_s0 + $0x2b0] sm:$0xff]  ;;  %v119_v44 = vld [vmem:[%s4113_s0 + $0x2d8] sm:$0xff] }
  0xae   :  { %1292 = vmatprep.mubr.f32.mxu0 %v249_v45  ;;  %v123_v45 = vld [vmem:[%s4113_s0 + $0x2f8] sm:$0xff] }
  0xb0   :  { %779 = vmatmul.mubr.f32.gmra.mrb[54].mxu1 %v244_v46  ;;  %v118_v46 = vld [vmem:[%s4113_s0 + $0x2d0] sm:$0xff] }
  0xb1   :  { %1293 = vmatmul.mubr.f32.gmra.mrb[54].mxu0 %v248_v47  ;;  %784 = vmatprep.mubr.f32.mxu1 %v253_v48  ;;  %v122_v47 = vld [vmem:[%s4113_s0 + $0x2f0] sm:$0xff]  ;;  %v127_v48 = vld [vmem:[%s4113_s0 + $0x318] sm:$0xff] }
  0xb2   :  { %1298 = vmatprep.mubr.f32.mxu0 %v257_v49  ;;  %v131_v49 = vld [vmem:[%s4113_s0 + $0x338] sm:$0xff] }
  0xb4   :  { %785 = vmatmul.mubr.f32.gmra.mrb[56].mxu1 %v252_v50  ;;  %v126_v50 = vld [vmem:[%s4113_s0 + $0x310] sm:$0xff] }
  0xb5   :  { %1299 = vmatmul.mubr.f32.gmra.mrb[56].mxu0 %v256_v51  ;;  %790 = vmatprep.mubr.f32.mxu1 %v261_v52  ;;  %v130_v51 = vld [vmem:[%s4113_s0 + $0x330] sm:$0xff]  ;;  %v135_v52 = vld [vmem:[%s4113_s0 + $0x358] sm:$0xff] }
  0xb6   :  { %1304 = vmatprep.mubr.f32.mxu0 %v265_v53  ;;  %v139_v53 = vld [vmem:[%s4113_s0 + $0x378] sm:$0xff] }
  0xb8   :  { %791 = vmatmul.mubr.f32.gmra.mrb[58].mxu1 %v260_v54  ;;  %v134_v54 = vld [vmem:[%s4113_s0 + $0x350] sm:$0xff] }
  0xb9   :  { %1305 = vmatmul.mubr.f32.gmra.mrb[58].mxu0 %v264_v55  ;;  %796 = vmatprep.mubr.f32.mxu1 %v269_v56  ;;  %v138_v55 = vld [vmem:[%s4113_s0 + $0x370] sm:$0xff]  ;;  %v143_v56 = vld [vmem:[%s4113_s0 + $0x398] sm:$0xff] }
  0xba   :  { %1310 = vmatprep.mubr.f32.mxu0 %v273_v57  ;;  %v147_v57 = vld [vmem:[%s4113_s0 + $0x3b8] sm:$0xff] }
  0xbc   :  { %797 = vmatmul.mubr.f32.gmra.mrb[60].mxu1 %v268_v58  ;;  %v142_v58 = vld [vmem:[%s4113_s0 + $0x390] sm:$0xff] }
  0xbd   :  { %1311 = vmatmul.mubr.f32.gmra.mrb[60].mxu0 %v272_v59  ;;  %802 = vmatprep.mubr.f32.mxu1 %v277_v60  ;;  %v146_v59 = vld [vmem:[%s4113_s0 + $0x3b0] sm:$0xff]  ;;  %v151_v60 = vld [vmem:[%s4113_s0 + $0x3d8] sm:$0xff] }
  0xbe   :  { %1316 = vmatprep.mubr.f32.mxu0 %v281_v61  ;;  %v155_v61 = vld [vmem:[%s4113_s0 + $0x3f8] sm:$0xff] }
  0xc0   :  { %803 = vmatmul.mubr.f32.gmra.mrb[62].mxu1 %v276_v62  ;;  %v150_v62 = vld [vmem:[%s4113_s0 + $0x3d0] sm:$0xff] }
  0xc1   :  { %1317 = vmatmul.mubr.f32.gmra.mrb[62].mxu0 %v280_v63  ;;  %873 = vmatprep.mubr.f32.mxu1 %v31_v0  ;;  %v154_v63 = vld [vmem:[%s4113_s0 + $0x3f0] sm:$0xff]  ;;  %v159_v0 = vld [vmem:[%s4113_s0 + $0x418] sm:$0xff] }
  0xc2   :  { %1387 = vmatprep.mubr.f32.mxu0 %v35_v1  ;;  %v163_v1 = vld [vmem:[%s4113_s0 + $0x438] sm:$0xff] }
  0xc4   :  { %874 = vmatmul.mubr.f32.vlgmr.msra.gmra.mrb[0].mxu1 %v30_v2  ;;  %v158_v2 = vld [vmem:[%s4113_s0 + $0x410] sm:$0xff] }
  0xc5   :  { %1388 = vmatmul.mubr.f32.vlgmr.msra.gmra.mrb[0].mxu0 %v34_v3  ;;  %879 = vmatprep.mubr.f32.mxu1 %v39_v4  ;;  %v162_v3 = vld [vmem:[%s4113_s0 + $0x430] sm:$0xff]  ;;  %v167_v4 = vld [vmem:[%s4113_s0 + $0x458] sm:$0xff] }
  0xc6   :  { %1393 = vmatprep.mubr.f32.mxu0 %v43_v5  ;;  %v171_v5 = vld [vmem:[%s4113_s0 + $0x478] sm:$0xff] }
  0xc8   :  { %880 = vmatmul.mubr.f32.gmra.mrb[2].mxu1 %v38_v6  ;;  %v166_v6 = vld [vmem:[%s4113_s0 + $0x450] sm:$0xff] }
  0xc9   :  { %1394 = vmatmul.mubr.f32.gmra.mrb[2].mxu0 %v42_v7  ;;  %885 = vmatprep.mubr.f32.mxu1 %v47_v8  ;;  %v170_v7 = vld [vmem:[%s4113_s0 + $0x470] sm:$0xff]  ;;  %v175_v8 = vld [vmem:[%s4113_s0 + $0x498] sm:$0xff] }
  0xca   :  { %1399 = vmatprep.mubr.f32.mxu0 %v51_v9  ;;  %v179_v9 = vld [vmem:[%s4113_s0 + $0x4b8] sm:$0xff] }
  0xcc   :  { %886 = vmatmul.mubr.f32.gmra.mrb[4].mxu1 %v46_v10  ;;  %v174_v10 = vld [vmem:[%s4113_s0 + $0x490] sm:$0xff] }
  0xcd   :  { %1400 = vmatmul.mubr.f32.gmra.mrb[4].mxu0 %v50_v11  ;;  %891 = vmatprep.mubr.f32.mxu1 %v55_v12  ;;  %v178_v11 = vld [vmem:[%s4113_s0 + $0x4b0] sm:$0xff]  ;;  %v183_v12 = vld [vmem:[%s4113_s0 + $0x4d8] sm:$0xff] }
  0xce   :  { %1405 = vmatprep.mubr.f32.mxu0 %v59_v13  ;;  %v187_v13 = vld [vmem:[%s4113_s0 + $0x4f8] sm:$0xff] }
  0xd0   :  { %892 = vmatmul.mubr.f32.gmra.mrb[6].mxu1 %v54_v14  ;;  %v182_v14 = vld [vmem:[%s4113_s0 + $0x4d0] sm:$0xff] }
  0xd1   :  { %1406 = vmatmul.mubr.f32.gmra.mrb[6].mxu0 %v58_v15  ;;  %897 = vmatprep.mubr.f32.mxu1 %v63_v16  ;;  %v186_v15 = vld [vmem:[%s4113_s0 + $0x4f0] sm:$0xff]  ;;  %v191_v16 = vld [vmem:[%s4113_s0 + $0x518] sm:$0xff] }
  0xd2   :  { %1411 = vmatprep.mubr.f32.mxu0 %v67_v17  ;;  %v195_v17 = vld [vmem:[%s4113_s0 + $0x538] sm:$0xff] }
  0xd4   :  { %898 = vmatmul.mubr.f32.gmra.mrb[8].mxu1 %v62_v18  ;;  %v190_v18 = vld [vmem:[%s4113_s0 + $0x510] sm:$0xff] }
  0xd5   :  { %1412 = vmatmul.mubr.f32.gmra.mrb[8].mxu0 %v66_v19  ;;  %903 = vmatprep.mubr.f32.mxu1 %v71_v20  ;;  %v194_v19 = vld [vmem:[%s4113_s0 + $0x530] sm:$0xff]  ;;  %v199_v20 = vld [vmem:[%s4113_s0 + $0x558] sm:$0xff] }
  0xd6   :  { %1417 = vmatprep.mubr.f32.mxu0 %v75_v21  ;;  %v203_v21 = vld [vmem:[%s4113_s0 + $0x578] sm:$0xff] }
  0xd8   :  { %904 = vmatmul.mubr.f32.gmra.mrb[10].mxu1 %v70_v22  ;;  %v198_v22 = vld [vmem:[%s4113_s0 + $0x550] sm:$0xff] }
  0xd9   :  { %1418 = vmatmul.mubr.f32.gmra.mrb[10].mxu0 %v74_v23  ;;  %909 = vmatprep.mubr.f32.mxu1 %v79_v24  ;;  %v202_v23 = vld [vmem:[%s4113_s0 + $0x570] sm:$0xff]  ;;  %v207_v24 = vld [vmem:[%s4113_s0 + $0x598] sm:$0xff] }
  0xda   :  { %1423 = vmatprep.mubr.f32.mxu0 %v83_v25  ;;  %v211_v25 = vld [vmem:[%s4113_s0 + $0x5b8] sm:$0xff] }
  0xdc   :  { %910 = vmatmul.mubr.f32.gmra.mrb[12].mxu1 %v78_v26  ;;  %v206_v26 = vld [vmem:[%s4113_s0 + $0x590] sm:$0xff] }
  0xdd   :  { %1424 = vmatmul.mubr.f32.gmra.mrb[12].mxu0 %v82_v27  ;;  %915 = vmatprep.mubr.f32.mxu1 %v87_v28  ;;  %v210_v27 = vld [vmem:[%s4113_s0 + $0x5b0] sm:$0xff]  ;;  %v215_v28 = vld [vmem:[%s4113_s0 + $0x5d8] sm:$0xff] }
  0xde   :  { %1429 = vmatprep.mubr.f32.mxu0 %v91_v29  ;;  %v219_v29 = vld [vmem:[%s4113_s0 + $0x5f8] sm:$0xff] }
  0xe0   :  { %916 = vmatmul.mubr.f32.gmra.mrb[14].mxu1 %v86_v30  ;;  %v214_v30 = vld [vmem:[%s4113_s0 + $0x5d0] sm:$0xff] }
  0xe1   :  { %1430 = vmatmul.mubr.f32.gmra.mrb[14].mxu0 %v90_v31  ;;  %921 = vmatprep.mubr.f32.mxu1 %v95_v32  ;;  %v218_v31 = vld [vmem:[%s4113_s0 + $0x5f0] sm:$0xff]  ;;  %v223_v32 = vld [vmem:[%s4113_s0 + $0x618] sm:$0xff] }
  0xe2   :  { %1435 = vmatprep.mubr.f32.mxu0 %v99_v33  ;;  %v227_v33 = vld [vmem:[%s4113_s0 + $0x638] sm:$0xff] }
  0xe4   :  { %922 = vmatmul.mubr.f32.gmra.mrb[16].mxu1 %v94_v34  ;;  %v222_v34 = vld [vmem:[%s4113_s0 + $0x610] sm:$0xff] }
  0xe5   :  { %1436 = vmatmul.mubr.f32.gmra.mrb[16].mxu0 %v98_v35  ;;  %927 = vmatprep.mubr.f32.mxu1 %v103_v36  ;;  %v226_v35 = vld [vmem:[%s4113_s0 + $0x630] sm:$0xff]  ;;  %v231_v36 = vld [vmem:[%s4113_s0 + $0x658] sm:$0xff] }
  0xe6   :  { %1441 = vmatprep.mubr.f32.mxu0 %v107_v37  ;;  %v235_v37 = vld [vmem:[%s4113_s0 + $0x678] sm:$0xff] }
  0xe8   :  { %928 = vmatmul.mubr.f32.gmra.mrb[18].mxu1 %v102_v38  ;;  %v230_v38 = vld [vmem:[%s4113_s0 + $0x650] sm:$0xff] }
  0xe9   :  { %1442 = vmatmul.mubr.f32.gmra.mrb[18].mxu0 %v106_v39  ;;  %933 = vmatprep.mubr.f32.mxu1 %v111_v40  ;;  %v234_v39 = vld [vmem:[%s4113_s0 + $0x670] sm:$0xff]  ;;  %v239_v40 = vld [vmem:[%s4113_s0 + $0x698] sm:$0xff] }
  0xea   :  { %1447 = vmatprep.mubr.f32.mxu0 %v115_v41  ;;  %v243_v41 = vld [vmem:[%s4113_s0 + $0x6b8] sm:$0xff] }
  0xec   :  { %934 = vmatmul.mubr.f32.gmra.mrb[20].mxu1 %v110_v42  ;;  %v238_v42 = vld [vmem:[%s4113_s0 + $0x690] sm:$0xff] }
  0xed   :  { %1448 = vmatmul.mubr.f32.gmra.mrb[20].mxu0 %v114_v43  ;;  %939 = vmatprep.mubr.f32.mxu1 %v119_v44  ;;  %v242_v43 = vld [vmem:[%s4113_s0 + $0x6b0] sm:$0xff]  ;;  %v247_v44 = vld [vmem:[%s4113_s0 + $0x6d8] sm:$0xff] }
  0xee   :  { %1453 = vmatprep.mubr.f32.mxu0 %v123_v45  ;;  %v251_v45 = vld [vmem:[%s4113_s0 + $0x6f8] sm:$0xff] }
  0xf0   :  { %940 = vmatmul.mubr.f32.gmra.mrb[22].mxu1 %v118_v46  ;;  %v246_v46 = vld [vmem:[%s4113_s0 + $0x6d0] sm:$0xff] }
  0xf1   :  { %1454 = vmatmul.mubr.f32.gmra.mrb[22].mxu0 %v122_v47  ;;  %945 = vmatprep.mubr.f32.mxu1 %v127_v48  ;;  %v250_v47 = vld [vmem:[%s4113_s0 + $0x6f0] sm:$0xff]  ;;  %v255_v48 = vld [vmem:[%s4113_s0 + $0x718] sm:$0xff] }
  0xf2   :  { %1459 = vmatprep.mubr.f32.mxu0 %v131_v49  ;;  %v259_v49 = vld [vmem:[%s4113_s0 + $0x738] sm:$0xff] }
  0xf4   :  { %946 = vmatmul.mubr.f32.gmra.mrb[24].mxu1 %v126_v50  ;;  %v254_v50 = vld [vmem:[%s4113_s0 + $0x710] sm:$0xff] }
  0xf5   :  { %1460 = vmatmul.mubr.f32.gmra.mrb[24].mxu0 %v130_v51  ;;  %951 = vmatprep.mubr.f32.mxu1 %v135_v52  ;;  %v258_v51 = vld [vmem:[%s4113_s0 + $0x730] sm:$0xff]  ;;  %v263_v52 = vld [vmem:[%s4113_s0 + $0x758] sm:$0xff] }
  0xf6   :  { %1465 = vmatprep.mubr.f32.mxu0 %v139_v53  ;;  %v267_v53 = vld [vmem:[%s4113_s0 + $0x778] sm:$0xff] }
  0xf8   :  { %952 = vmatmul.mubr.f32.gmra.mrb[26].mxu1 %v134_v54  ;;  %v262_v54 = vld [vmem:[%s4113_s0 + $0x750] sm:$0xff] }
  0xf9   :  { %1466 = vmatmul.mubr.f32.gmra.mrb[26].mxu0 %v138_v55  ;;  %957 = vmatprep.mubr.f32.mxu1 %v143_v56  ;;  %v266_v55 = vld [vmem:[%s4113_s0 + $0x770] sm:$0xff]  ;;  %v271_v56 = vld [vmem:[%s4113_s0 + $0x798] sm:$0xff] }
  0xfa   :  { %1471 = vmatprep.mubr.f32.mxu0 %v147_v57  ;;  %v275_v57 = vld [vmem:[%s4113_s0 + $0x7b8] sm:$0xff] }
  0xfc   :  { %958 = vmatmul.mubr.f32.gmra.mrb[28].mxu1 %v142_v58  ;;  %v270_v58 = vld [vmem:[%s4113_s0 + $0x790] sm:$0xff] }
  0xfd   :  { %1472 = vmatmul.mubr.f32.gmra.mrb[28].mxu0 %v146_v59  ;;  %963 = vmatprep.mubr.f32.mxu1 %v151_v60  ;;  %v274_v59 = vld [vmem:[%s4113_s0 + $0x7b0] sm:$0xff]  ;;  %v279_v60 = vld [vmem:[%s4113_s0 + $0x7d8] sm:$0xff] }
  0xfe   :  { %1477 = vmatprep.mubr.f32.mxu0 %v155_v61  ;;  %v283_v61 = vld [vmem:[%s4113_s0 + $0x7f8] sm:$0xff] }
 0x100   :  { %964 = vmatmul.mubr.f32.gmra.mrb[30].mxu1 %v150_v62  ;;  %v278_v62 = vld [vmem:[%s4113_s0 + $0x7d0] sm:$0xff] }
 0x101   :  { %1478 = vmatmul.mubr.f32.gmra.mrb[30].mxu0 %v154_v63  ;;  %969 = vmatprep.mubr.f32.mxu1 %v159_v0  ;;  %v282_v63 = vld [vmem:[%s4113_s0 + $0x7f0] sm:$0xff]  ;;  %v542_v0 = vlaneseq }
 0x102   :  { %1483 = vmatprep.mubr.f32.mxu0 %v163_v1 }
 0x103   :  { %v4001_v1 = vshrl.u32 %v542_v0, 7  ;;  %vm1803_vm0 = vcmp.lt.s32.totalorder %v542_v0, 256 }
 0x104   :  { %970 = vmatmul.mubr.f32.gmra.mrb[32].mxu1 %v158_v2 }
 0x105   :  { %1484 = vmatmul.mubr.f32.gmra.mrb[32].mxu0 %v162_v3  ;;  %975 = vmatprep.mubr.f32.mxu1 %v167_v4  ;;  %v544_v2 = vsub.s32 0, %v4001_v1  ;;  %v540_v3 = vld [vmem:[%s4114_s2] sm:$0x3]  ;;  %v548_v4 = vsub.s32 1, %v4001_v1 }
 0x106   :  { %1489 = vmatprep.mubr.f32.mxu0 %v171_v5 }
 0x107   :  { %v4010_v5 = vrot.slane %v540_v3, %v544_v2 }
 0x108   :  { %976 = vmatmul.mubr.f32.gmra.mrb[34].mxu1 %v166_v6  ;;  %v4012_v6 = vrot.slane %v540_v3, %v548_v4 }
 0x109   :  { %1490 = vmatmul.mubr.f32.gmra.mrb[34].mxu0 %v170_v7  ;;  %981 = vmatprep.mubr.f32.mxu1 %v175_v8 }
 0x10a   :  { %1495 = vmatprep.mubr.f32.mxu0 %v179_v9 }
 0x10c   :  { %982 = vmatmul.mubr.f32.gmra.mrb[36].mxu1 %v174_v10 }
 0x10d   :  { %1496 = vmatmul.mubr.f32.gmra.mrb[36].mxu0 %v178_v11  ;;  %987 = vmatprep.mubr.f32.mxu1 %v183_v12 }
 0x10e   :  { %1501 = vmatprep.mubr.f32.mxu0 %v187_v13 }
 0x110   :  { %988 = vmatmul.mubr.f32.gmra.mrb[38].mxu1 %v182_v14 }
 0x111   :  { %1502 = vmatmul.mubr.f32.gmra.mrb[38].mxu0 %v186_v15  ;;  %993 = vmatprep.mubr.f32.mxu1 %v191_v16 }
 0x112   :  { %1507 = vmatprep.mubr.f32.mxu0 %v195_v17 }
 0x114   :  { %994 = vmatmul.mubr.f32.gmra.mrb[40].mxu1 %v190_v18 }
 0x115   :  { %1508 = vmatmul.mubr.f32.gmra.mrb[40].mxu0 %v194_v19  ;;  %999 = vmatprep.mubr.f32.mxu1 %v199_v20 }
 0x116   :  { %1513 = vmatprep.mubr.f32.mxu0 %v203_v21 }
 0x118   :  { %1000 = vmatmul.mubr.f32.gmra.mrb[42].mxu1 %v198_v22 }
 0x119   :  { %1514 = vmatmul.mubr.f32.gmra.mrb[42].mxu0 %v202_v23  ;;  %1005 = vmatprep.mubr.f32.mxu1 %v207_v24  ;;  %v1645_v24 = vld [vmem:[%s4115_s3 + $0x8] sm:$0xff] }
 0x11a   :  { %1519 = vmatprep.mubr.f32.mxu0 %v211_v25  ;;  %v1647_v25 = vld [vmem:[%s4115_s3 + $0x18] sm:$0xff] }
 0x11c   :  { %1006 = vmatmul.mubr.f32.gmra.mrb[44].mxu1 %v206_v26 }
 0x11d   :  { %1520 = vmatmul.mubr.f32.gmra.mrb[44].mxu0 %v210_v27  ;;  %1011 = vmatprep.mubr.f32.mxu1 %v215_v28 }
 0x11e   :  { %1525 = vmatprep.mubr.f32.mxu0 %v219_v29 }
 0x120   :  { %1012 = vmatmul.mubr.f32.gmra.mrb[46].mxu1 %v214_v30 }
 0x121   :  { %1526 = vmatmul.mubr.f32.gmra.mrb[46].mxu0 %v218_v31  ;;  %1017 = vmatprep.mubr.f32.mxu1 %v223_v32 }
 0x122   :  { %1531 = vmatprep.mubr.f32.mxu0 %v227_v33 }
 0x124   :  { %1018 = vmatmul.mubr.f32.gmra.mrb[48].mxu1 %v222_v34 }
 0x125   :  { %1532 = vmatmul.mubr.f32.gmra.mrb[48].mxu0 %v226_v35  ;;  %1023 = vmatprep.mubr.f32.mxu1 %v231_v36 }
 0x126   :  { %1537 = vmatprep.mubr.f32.mxu0 %v235_v37 }
 0x128   :  { %1024 = vmatmul.mubr.f32.gmra.mrb[50].mxu1 %v230_v38 }
 0x129   :  { %1538 = vmatmul.mubr.f32.gmra.mrb[50].mxu0 %v234_v39  ;;  %1029 = vmatprep.mubr.f32.mxu1 %v239_v40 }
 0x12a   :  { %1543 = vmatprep.mubr.f32.mxu0 %v243_v41 }
 0x12c   :  { %1030 = vmatmul.mubr.f32.gmra.mrb[52].mxu1 %v238_v42 }
 0x12d   :  { %1544 = vmatmul.mubr.f32.gmra.mrb[52].mxu0 %v242_v43  ;;  %1035 = vmatprep.mubr.f32.mxu1 %v247_v44 }
 0x12e   :  { %1549 = vmatprep.mubr.f32.mxu0 %v251_v45 }
 0x130   :  { %1036 = vmatmul.mubr.f32.gmra.mrb[54].mxu1 %v246_v46  ;;  %v1648_v46 = vld [vmem:[%s4116_s4] sm:$0xff] }
 0x131   :  { %1550 = vmatmul.mubr.f32.gmra.mrb[54].mxu0 %v250_v47  ;;  %1041 = vmatprep.mubr.f32.mxu1 %v255_v48  ;;  %v1741_v47 = vld [vmem:[%s4117_s5] sm:$0xff]  ;;  %v12_v48 = vstv %s4118_s6 }
 0x132   :  { %1555 = vmatprep.mubr.f32.mxu0 %v259_v49  ;;  %13 = vst [vmem:[#allocation2] sm:$0x1] %v12_v48 }
 0x134   :  { %1042 = vmatmul.mubr.f32.gmra.mrb[56].mxu1 %v254_v50 }
 0x135   :  { %1556 = vmatmul.mubr.f32.gmra.mrb[56].mxu0 %v258_v51  ;;  %1047 = vmatprep.mubr.f32.mxu1 %v263_v52  ;;  %v2422_v51 = vmov 0  }
 0x136   :  { %1561 = vmatprep.mubr.f32.mxu0 %v267_v53  ;;  %2420 = vset.pattern.permute.xlu0 %v2422_v51 }
 0x137   :  { %2421 = vset.pattern.permute.xlu1 %v2422_v51  ;;  %1652 = vperm.xlu0 %2420, %v1648_v46  }
 0x138   :  { %1048 = vmatmul.mubr.f32.gmra.mrb[58].mxu1 %v262_v54  ;;  %1745 = vperm.xlu1 %2421, %v1741_v47  }
 0x139   :  { %1562 = vmatmul.mubr.f32.gmra.mrb[58].mxu0 %v266_v55  ;;  %1053 = vmatprep.mubr.f32.mxu1 %v271_v56 }
 0x13a   :  { %1567 = vmatprep.mubr.f32.mxu0 %v275_v57 }
 0x13c   :  { %1054 = vmatmul.mubr.f32.gmra.mrb[60].mxu1 %v270_v58 }
 0x13d   :  { %1568 = vmatmul.mubr.f32.gmra.mrb[60].mxu0 %v274_v59  ;;  %1059 = vmatprep.mubr.f32.mxu1 %v279_v60 }
 0x13e   :  { %1573 = vmatprep.mubr.f32.mxu0 %v283_v61  ;;  %v1649_v61 = vld [vmem:[%s4116_s4 + $0x8] sm:$0xff] }
 0x13f   :  { %1657 = vperm.xlu0 %2420, %v1649_v61  }
 0x140   :  { %1060 = vmatmul.mubr.f32.gmra.mrb[62].mxu1 %v278_v62  ;;  %v1742_v62 = vld [vmem:[%s4117_s5 + $0x8] sm:$0xff] }
 0x141   :  { %1574 = vmatmul.mubr.f32.gmra.mrb[62].mxu0 %v282_v63  ;;  %1730 = vmatprep.mubr.f32.mxu1 %v1647_v25 }
 0x142   :  { %1724 = vmatprep.mubr.f32.mxu0 %v1645_v24  ;;  %1750 = vperm.xlu1 %2421, %v1742_v62  }
 0x197   :  { %v875_v7 = vpop.f32.mrb[0].mxu1 }
 0x198   :  { %v2162_v8 = vadd.f32 %v875_v7, %v4010_v5  ;;  %v1389_v9 = vpop.f32.mrb[0].mxu0  ;;  %v877_v10 = vpop.f32.mrb[1].mxu1 }
 0x199   :  { %v2164_v11 = vadd.f32 %v877_v10, %v4012_v6  ;;  %v1391_v12 = vpop.f32.mrb[1].mxu0 }
 0x19a   :  { %v2163_v13 = vadd.f32 %v2162_v8, %v1389_v9 }
 0x19b   :  { %v2165_v14 = vadd.f32 %v2164_v11, %v1391_v12  ;;  %v881_v15 = vpop.f32.mrb[2].mxu1 }
 0x19c   :  { %v2166_v16 = vadd.f32 %v881_v15, %v4010_v5  ;;  %v1395_v17 = vpop.f32.mrb[2].mxu0  ;;  %v883_v18 = vpop.f32.mrb[3].mxu1  ;;  %v1580_v26 = vmax.f32 %v2163_v13, 0.0  ;;  %v1771_v15 = vld [vmem:[#allocation2] sm:$0x1] }
 0x19d   :  { %v2168_v19 = vadd.f32 %v883_v18, %v4012_v6  ;;  %v1397_v20 = vpop.f32.mrb[3].mxu0  ;;  %v1581_v31 = vmax.f32 %v2165_v14, 0.0  ;;  %1774 = vperm.xlu0 %2420, %v1771_v15  }
 0x19e   :  { %v2167_v21 = vadd.f32 %v2166_v16, %v1395_v17 }
 0x19f   :  { %v2169_v22 = vadd.f32 %v2168_v19, %v1397_v20  ;;  %v887_v23 = vpop.f32.mrb[4].mxu1 }
 0x1a0   :  { %v1582_v27 = vmax.f32 %v2167_v21, 0.0  ;;  %v2170_v28 = vadd.f32 %v887_v23, %v4010_v5  ;;  %v1401_v29 = vpop.f32.mrb[4].mxu0  ;;  %v889_v30 = vpop.f32.mrb[5].mxu1 }
 0x1a1   :  { %v1583_v32 = vmax.f32 %v2169_v22, 0.0  ;;  %v2172_v33 = vadd.f32 %v889_v30, %v4012_v6  ;;  %v1403_v34 = vpop.f32.mrb[5].mxu0 }
 0x1a2   :  { %v2068_v35 = vpack.c.bf16 %v1582_v27, %v1580_v26  ;;  %v2171_v36 = vadd.f32 %v2170_v28, %v1401_v29 }
 0x1a3   :  { %v2066_v37 = vpack.c.bf16 %v1583_v32, %v1581_v31  ;;  %v2173_v38 = vadd.f32 %v2172_v33, %v1403_v34  ;;  %v893_v39 = vpop.f32.mrb[6].mxu1 }
 0x1a4   :  { %v2174_v40 = vadd.f32 %v893_v39, %v4010_v5  ;;  %v1407_v41 = vpop.f32.mrb[6].mxu0  ;;  %v895_v42 = vpop.f32.mrb[7].mxu1  ;;  %v1584_v52 = vmax.f32 %v2171_v36, 0.0 }
 0x1a5   :  { %v2176_v43 = vadd.f32 %v895_v42, %v4012_v6  ;;  %v1409_v44 = vpop.f32.mrb[7].mxu0  ;;  %2067 = vmatprep.subr.bf16.mxu0 %v2066_v37  ;;  %2130 = vmatprep.subr.bf16.mxu1 %v2066_v37  ;;  %v1585_v57 = vmax.f32 %v2173_v38, 0.0 }
 0x1a6   :  { %v2175_v45 = vadd.f32 %v2174_v40, %v1407_v41  ;;  %2069 = vmatpush1.bf16.xpose.msra.mxu0 %v2068_v35  ;;  %2146 = vmatpush1.bf16.xpose.msra.mxu1 %v2068_v35 }
 0x1a7   :  { %v2177_v49 = vadd.f32 %v2176_v43, %v1409_v44  ;;  %v899_v50 = vpop.f32.mrb[8].mxu1 }
 0x1a8   :  { %v1586_v53 = vmax.f32 %v2175_v45, 0.0  ;;  %v2178_v54 = vadd.f32 %v899_v50, %v4010_v5  ;;  %v1413_v55 = vpop.f32.mrb[8].mxu0  ;;  %v901_v56 = vpop.f32.mrb[9].mxu1 }
 0x1a9   :  { %v1587_v58 = vmax.f32 %v2177_v49, 0.0  ;;  %v2180_v59 = vadd.f32 %v901_v56, %v4012_v6  ;;  %v1415_v60 = vpop.f32.mrb[9].mxu0 }
 0x1aa   :  { %v2072_v63 = vpack.c.bf16 %v1586_v53, %v1584_v52  ;;  %v2179_v3 = vadd.f32 %v2178_v54, %v1413_v55 }
 0x1ab   :  { %v2070_v4 = vpack.c.bf16 %v1587_v58, %v1585_v57  ;;  %v2181_v7 = vadd.f32 %v2180_v59, %v1415_v60  ;;  %v905_v8 = vpop.f32.mrb[10].mxu1 }
 0x1ac   :  { %v2182_v9 = vadd.f32 %v905_v8, %v4010_v5  ;;  %v1419_v10 = vpop.f32.mrb[10].mxu0  ;;  %v907_v11 = vpop.f32.mrb[11].mxu1  ;;  %v1588_v18 = vmax.f32 %v2179_v3, 0.0 }
 0x1ad   :  { %v2184_v12 = vadd.f32 %v907_v11, %v4012_v6  ;;  %v1421_v13 = vpop.f32.mrb[11].mxu0  ;;  %2071 = vmatprep.subr.bf16.mxu0 %v2070_v4  ;;  %2131 = vmatprep.subr.bf16.mxu1 %v2070_v4  ;;  %v1589_v23 = vmax.f32 %v2181_v7, 0.0 }
 0x1ae   :  { %v2183_v14 = vadd.f32 %v2182_v9, %v1419_v10  ;;  %2073 = vmatpush1.bf16.xpose.msra.mxu0 %v2072_v63  ;;  %2147 = vmatpush1.bf16.xpose.msra.mxu1 %v2072_v63 }
 0x1af   :  { %v2185_v16 = vadd.f32 %v2184_v12, %v1421_v13  ;;  %v911_v17 = vpop.f32.mrb[12].mxu1 }
 0x1b0   :  { %v1590_v19 = vmax.f32 %v2183_v14, 0.0  ;;  %v2186_v20 = vadd.f32 %v911_v17, %v4010_v5  ;;  %v1425_v21 = vpop.f32.mrb[12].mxu0  ;;  %v913_v22 = vpop.f32.mrb[13].mxu1 }
 0x1b1   :  { %v1591_v24 = vmax.f32 %v2185_v16, 0.0  ;;  %v2188_v25 = vadd.f32 %v913_v22, %v4012_v6  ;;  %v1427_v26 = vpop.f32.mrb[13].mxu0 }
 0x1b2   :  { %v2076_v27 = vpack.c.bf16 %v1590_v19, %v1588_v18  ;;  %v2187_v28 = vadd.f32 %v2186_v20, %v1425_v21 }
 0x1b3   :  { %v2074_v29 = vpack.c.bf16 %v1591_v24, %v1589_v23  ;;  %v2189_v30 = vadd.f32 %v2188_v25, %v1427_v26  ;;  %v917_v31 = vpop.f32.mrb[14].mxu1 }
 0x1b4   :  { %v2190_v32 = vadd.f32 %v917_v31, %v4010_v5  ;;  %v1431_v33 = vpop.f32.mrb[14].mxu0  ;;  %v919_v34 = vpop.f32.mrb[15].mxu1  ;;  %v1592_v40 = vmax.f32 %v2187_v28, 0.0 }
 0x1b5   :  { %v2192_v35 = vadd.f32 %v919_v34, %v4012_v6  ;;  %v1433_v36 = vpop.f32.mrb[15].mxu0  ;;  %2075 = vmatprep.subr.bf16.mxu0 %v2074_v29  ;;  %2132 = vmatprep.subr.bf16.mxu1 %v2074_v29  ;;  %v1593_v45 = vmax.f32 %v2189_v30, 0.0 }
 0x1b6   :  { %v2191_v37 = vadd.f32 %v2190_v32, %v1431_v33  ;;  %2077 = vmatpush1.bf16.xpose.msra.mxu0 %v2076_v27  ;;  %2148 = vmatpush1.bf16.xpose.msra.mxu1 %v2076_v27 }
 0x1b7   :  { %v2193_v38 = vadd.f32 %v2192_v35, %v1433_v36  ;;  %v923_v39 = vpop.f32.mrb[16].mxu1 }
 0x1b8   :  { %v1594_v41 = vmax.f32 %v2191_v37, 0.0  ;;  %v2194_v42 = vadd.f32 %v923_v39, %v4010_v5  ;;  %v1437_v43 = vpop.f32.mrb[16].mxu0  ;;  %v925_v44 = vpop.f32.mrb[17].mxu1 }
 0x1b9   :  { %v1595_v46 = vmax.f32 %v2193_v38, 0.0  ;;  %v2196_v47 = vadd.f32 %v925_v44, %v4012_v6  ;;  %v1439_v48 = vpop.f32.mrb[17].mxu0 }
 0x1ba   :  { %v2080_v49 = vpack.c.bf16 %v1594_v41, %v1592_v40  ;;  %v2195_v50 = vadd.f32 %v2194_v42, %v1437_v43 }
 0x1bb   :  { %v2078_v51 = vpack.c.bf16 %v1595_v46, %v1593_v45  ;;  %v2197_v52 = vadd.f32 %v2196_v47, %v1439_v48  ;;  %v929_v53 = vpop.f32.mrb[18].mxu1 }
 0x1bc   :  { %v2198_v54 = vadd.f32 %v929_v53, %v4010_v5  ;;  %v1443_v55 = vpop.f32.mrb[18].mxu0  ;;  %v931_v56 = vpop.f32.mrb[19].mxu1  ;;  %v1596_v62 = vmax.f32 %v2195_v50, 0.0 }
 0x1bd   :  { %v2200_v57 = vadd.f32 %v931_v56, %v4012_v6  ;;  %v1445_v58 = vpop.f32.mrb[19].mxu0  ;;  %2079 = vmatprep.subr.bf16.mxu0 %v2078_v51  ;;  %2133 = vmatprep.subr.bf16.mxu1 %v2078_v51  ;;  %v1597_v8 = vmax.f32 %v2197_v52, 0.0 }
 0x1be   :  { %v2199_v59 = vadd.f32 %v2198_v54, %v1443_v55  ;;  %2081 = vmatpush1.bf16.xpose.msra.mxu0 %v2080_v49  ;;  %2149 = vmatpush1.bf16.xpose.msra.mxu1 %v2080_v49 }
 0x1bf   :  { %v2201_v60 = vadd.f32 %v2200_v57, %v1445_v58  ;;  %v935_v61 = vpop.f32.mrb[20].mxu1 }
 0x1c0   :  { %v1598_v63 = vmax.f32 %v2199_v59, 0.0  ;;  %v2202_v3 = vadd.f32 %v935_v61, %v4010_v5  ;;  %v1449_v4 = vpop.f32.mrb[20].mxu0  ;;  %v937_v7 = vpop.f32.mrb[21].mxu1 }
 0x1c1   :  { %v1599_v9 = vmax.f32 %v2201_v60, 0.0  ;;  %v2204_v10 = vadd.f32 %v937_v7, %v4012_v6  ;;  %v1451_v11 = vpop.f32.mrb[21].mxu0 }
 0x1c2   :  { %v2084_v12 = vpack.c.bf16 %v1598_v63, %v1596_v62  ;;  %v2203_v13 = vadd.f32 %v2202_v3, %v1449_v4 }
 0x1c3   :  { %v2082_v14 = vpack.c.bf16 %v1599_v9, %v1597_v8  ;;  %v2205_v15 = vadd.f32 %v2204_v10, %v1451_v11  ;;  %v941_v16 = vpop.f32.mrb[22].mxu1 }
 0x1c4   :  { %v2206_v17 = vadd.f32 %v941_v16, %v4010_v5  ;;  %v1455_v18 = vpop.f32.mrb[22].mxu0  ;;  %v943_v19 = vpop.f32.mrb[23].mxu1  ;;  %v1600_v25 = vmax.f32 %v2203_v13, 0.0 }
 0x1c5   :  { %v2208_v20 = vadd.f32 %v943_v19, %v4012_v6  ;;  %v1457_v21 = vpop.f32.mrb[23].mxu0  ;;  %2083 = vmatprep.subr.bf16.mxu0 %v2082_v14  ;;  %2134 = vmatprep.subr.bf16.mxu1 %v2082_v14  ;;  %v1601_v30 = vmax.f32 %v2205_v15, 0.0 }
 0x1c6   :  { %v2207_v22 = vadd.f32 %v2206_v17, %v1455_v18  ;;  %2085 = vmatpush1.bf16.xpose.msra.mxu0 %v2084_v12  ;;  %2150 = vmatpush1.bf16.xpose.msra.mxu1 %v2084_v12 }
 0x1c7   :  { %v2209_v23 = vadd.f32 %v2208_v20, %v1457_v21  ;;  %v947_v24 = vpop.f32.mrb[24].mxu1 }
 0x1c8   :  { %v1602_v26 = vmax.f32 %v2207_v22, 0.0  ;;  %v2210_v27 = vadd.f32 %v947_v24, %v4010_v5  ;;  %v1461_v28 = vpop.f32.mrb[24].mxu0  ;;  %v949_v29 = vpop.f32.mrb[25].mxu1 }
 0x1c9   :  { %v1603_v31 = vmax.f32 %v2209_v23, 0.0  ;;  %v2212_v32 = vadd.f32 %v949_v29, %v4012_v6  ;;  %v1463_v33 = vpop.f32.mrb[25].mxu0 }
 0x1ca   :  { %v2088_v34 = vpack.c.bf16 %v1602_v26, %v1600_v25  ;;  %v2211_v35 = vadd.f32 %v2210_v27, %v1461_v28 }
 0x1cb   :  { %v2086_v36 = vpack.c.bf16 %v1603_v31, %v1601_v30  ;;  %v2213_v37 = vadd.f32 %v2212_v32, %v1463_v33  ;;  %v953_v38 = vpop.f32.mrb[26].mxu1 }
 0x1cc   :  { %v2214_v39 = vadd.f32 %v953_v38, %v4010_v5  ;;  %v1467_v40 = vpop.f32.mrb[26].mxu0  ;;  %v955_v41 = vpop.f32.mrb[27].mxu1  ;;  %v1604_v47 = vmax.f32 %v2211_v35, 0.0 }
 0x1cd   :  { %v2216_v42 = vadd.f32 %v955_v41, %v4012_v6  ;;  %v1469_v43 = vpop.f32.mrb[27].mxu0  ;;  %2087 = vmatprep.subr.bf16.mxu0 %v2086_v36  ;;  %2135 = vmatprep.subr.bf16.mxu1 %v2086_v36  ;;  %v1605_v52 = vmax.f32 %v2213_v37, 0.0 }
 0x1ce   :  { %v2215_v44 = vadd.f32 %v2214_v39, %v1467_v40  ;;  %2089 = vmatpush1.bf16.xpose.msra.mxu0 %v2088_v34  ;;  %2151 = vmatpush1.bf16.xpose.msra.mxu1 %v2088_v34 }
 0x1cf   :  { %v2217_v45 = vadd.f32 %v2216_v42, %v1469_v43  ;;  %v959_v46 = vpop.f32.mrb[28].mxu1 }
 0x1d0   :  { %v1606_v48 = vmax.f32 %v2215_v44, 0.0  ;;  %v2218_v49 = vadd.f32 %v959_v46, %v4010_v5  ;;  %v1473_v50 = vpop.f32.mrb[28].mxu0  ;;  %v961_v51 = vpop.f32.mrb[29].mxu1 }
 0x1d1   :  { %v1607_v53 = vmax.f32 %v2217_v45, 0.0  ;;  %v2220_v54 = vadd.f32 %v961_v51, %v4012_v6  ;;  %v1475_v55 = vpop.f32.mrb[29].mxu0 }
 0x1d2   :  { %v2092_v56 = vpack.c.bf16 %v1606_v48, %v1604_v47  ;;  %v2219_v57 = vadd.f32 %v2218_v49, %v1473_v50 }
 0x1d3   :  { %v2090_v58 = vpack.c.bf16 %v1607_v53, %v1605_v52  ;;  %v2221_v59 = vadd.f32 %v2220_v54, %v1475_v55  ;;  %v965_v60 = vpop.f32.mrb[30].mxu1 }
 0x1d4   :  { %v2222_v61 = vadd.f32 %v965_v60, %v4010_v5  ;;  %v1479_v62 = vpop.f32.mrb[30].mxu0  ;;  %v967_v63 = vpop.f32.mrb[31].mxu1  ;;  %v1608_v10 = vmax.f32 %v2219_v57, 0.0 }
 0x1d5   :  { %v2224_v3 = vadd.f32 %v967_v63, %v4012_v6  ;;  %v1481_v4 = vpop.f32.mrb[31].mxu0  ;;  %2091 = vmatprep.subr.bf16.mxu0 %v2090_v58  ;;  %2136 = vmatprep.subr.bf16.mxu1 %v2090_v58  ;;  %v1609_v15 = vmax.f32 %v2221_v59, 0.0 }
 0x1d6   :  { %v2223_v7 = vadd.f32 %v2222_v61, %v1479_v62  ;;  %2093 = vmatpush1.bf16.xpose.msra.mxu0 %v2092_v56  ;;  %2152 = vmatpush1.bf16.xpose.msra.mxu1 %v2092_v56 }
 0x1d7   :  { %v2225_v8 = vadd.f32 %v2224_v3, %v1481_v4  ;;  %v971_v9 = vpop.f32.mrb[32].mxu1 }
 0x1d8   :  { %v1610_v11 = vmax.f32 %v2223_v7, 0.0  ;;  %v2226_v12 = vadd.f32 %v971_v9, %v4010_v5  ;;  %v1485_v13 = vpop.f32.mrb[32].mxu0  ;;  %v973_v14 = vpop.f32.mrb[33].mxu1 }
 0x1d9   :  { %v1611_v16 = vmax.f32 %v2225_v8, 0.0  ;;  %v2228_v17 = vadd.f32 %v973_v14, %v4012_v6  ;;  %v1487_v18 = vpop.f32.mrb[33].mxu0 }
 0x1da   :  { %v2096_v19 = vpack.c.bf16 %v1610_v11, %v1608_v10  ;;  %v2227_v20 = vadd.f32 %v2226_v12, %v1485_v13 }
 0x1db   :  { %v2094_v21 = vpack.c.bf16 %v1611_v16, %v1609_v15  ;;  %v2229_v22 = vadd.f32 %v2228_v17, %v1487_v18  ;;  %v977_v23 = vpop.f32.mrb[34].mxu1 }
 0x1dc   :  { %v2230_v24 = vadd.f32 %v977_v23, %v4010_v5  ;;  %v1491_v25 = vpop.f32.mrb[34].mxu0  ;;  %v979_v26 = vpop.f32.mrb[35].mxu1  ;;  %v1612_v32 = vmax.f32 %v2227_v20, 0.0 }
 0x1dd   :  { %v2232_v27 = vadd.f32 %v979_v26, %v4012_v6  ;;  %v1493_v28 = vpop.f32.mrb[35].mxu0  ;;  %2095 = vmatprep.subr.bf16.mxu0 %v2094_v21  ;;  %2137 = vmatprep.subr.bf16.mxu1 %v2094_v21  ;;  %v1613_v37 = vmax.f32 %v2229_v22, 0.0 }
 0x1de   :  { %v2231_v29 = vadd.f32 %v2230_v24, %v1491_v25  ;;  %2097 = vmatpush1.bf16.xpose.msra.mxu0 %v2096_v19  ;;  %2153 = vmatpush1.bf16.xpose.msra.mxu1 %v2096_v19 }
 0x1df   :  { %v2233_v30 = vadd.f32 %v2232_v27, %v1493_v28  ;;  %v983_v31 = vpop.f32.mrb[36].mxu1 }
 0x1e0   :  { %v1614_v33 = vmax.f32 %v2231_v29, 0.0  ;;  %v2234_v34 = vadd.f32 %v983_v31, %v4010_v5  ;;  %v1497_v35 = vpop.f32.mrb[36].mxu0  ;;  %v985_v36 = vpop.f32.mrb[37].mxu1 }
 0x1e1   :  { %v1615_v38 = vmax.f32 %v2233_v30, 0.0  ;;  %v2236_v39 = vadd.f32 %v985_v36, %v4012_v6  ;;  %v1499_v40 = vpop.f32.mrb[37].mxu0 }
 0x1e2   :  { %v2100_v41 = vpack.c.bf16 %v1614_v33, %v1612_v32  ;;  %v2235_v42 = vadd.f32 %v2234_v34, %v1497_v35 }
 0x1e3   :  { %v2098_v43 = vpack.c.bf16 %v1615_v38, %v1613_v37  ;;  %v2237_v44 = vadd.f32 %v2236_v39, %v1499_v40  ;;  %v989_v45 = vpop.f32.mrb[38].mxu1 }
 0x1e4   :  { %v2238_v46 = vadd.f32 %v989_v45, %v4010_v5  ;;  %v1503_v47 = vpop.f32.mrb[38].mxu0  ;;  %v991_v48 = vpop.f32.mrb[39].mxu1  ;;  %v1616_v54 = vmax.f32 %v2235_v42, 0.0 }
 0x1e5   :  { %v2240_v49 = vadd.f32 %v991_v48, %v4012_v6  ;;  %v1505_v50 = vpop.f32.mrb[39].mxu0  ;;  %2099 = vmatprep.subr.bf16.mxu0 %v2098_v43  ;;  %2138 = vmatprep.subr.bf16.mxu1 %v2098_v43  ;;  %v1617_v59 = vmax.f32 %v2237_v44, 0.0 }
 0x1e6   :  { %v2239_v51 = vadd.f32 %v2238_v46, %v1503_v47  ;;  %2101 = vmatpush1.bf16.xpose.msra.mxu0 %v2100_v41  ;;  %2154 = vmatpush1.bf16.xpose.msra.mxu1 %v2100_v41 }
 0x1e7   :  { %v2241_v52 = vadd.f32 %v2240_v49, %v1505_v50  ;;  %v995_v53 = vpop.f32.mrb[40].mxu1 }
 0x1e8   :  { %v1618_v55 = vmax.f32 %v2239_v51, 0.0  ;;  %v2242_v56 = vadd.f32 %v995_v53, %v4010_v5  ;;  %v1509_v57 = vpop.f32.mrb[40].mxu0  ;;  %v997_v58 = vpop.f32.mrb[41].mxu1 }
 0x1e9   :  { %v1619_v60 = vmax.f32 %v2241_v52, 0.0  ;;  %v2244_v61 = vadd.f32 %v997_v58, %v4012_v6  ;;  %v1511_v62 = vpop.f32.mrb[41].mxu0 }
 0x1ea   :  { %v2104_v63 = vpack.c.bf16 %v1618_v55, %v1616_v54  ;;  %v2243_v3 = vadd.f32 %v2242_v56, %v1509_v57 }
 0x1eb   :  { %v2102_v4 = vpack.c.bf16 %v1619_v60, %v1617_v59  ;;  %v2245_v7 = vadd.f32 %v2244_v61, %v1511_v62  ;;  %v1001_v8 = vpop.f32.mrb[42].mxu1 }
 0x1ec   :  { %v2246_v9 = vadd.f32 %v1001_v8, %v4010_v5  ;;  %v1515_v10 = vpop.f32.mrb[42].mxu0  ;;  %v1003_v11 = vpop.f32.mrb[43].mxu1  ;;  %v1620_v17 = vmax.f32 %v2243_v3, 0.0 }
 0x1ed   :  { %v2248_v12 = vadd.f32 %v1003_v11, %v4012_v6  ;;  %v1517_v13 = vpop.f32.mrb[43].mxu0  ;;  %2103 = vmatprep.subr.bf16.mxu0 %v2102_v4  ;;  %2139 = vmatprep.subr.bf16.mxu1 %v2102_v4  ;;  %v1621_v22 = vmax.f32 %v2245_v7, 0.0 }
 0x1ee   :  { %v2247_v14 = vadd.f32 %v2246_v9, %v1515_v10  ;;  %2105 = vmatpush1.bf16.xpose.msra.mxu0 %v2104_v63  ;;  %2155 = vmatpush1.bf16.xpose.msra.mxu1 %v2104_v63 }
 0x1ef   :  { %v2249_v15 = vadd.f32 %v2248_v12, %v1517_v13  ;;  %v1007_v16 = vpop.f32.mrb[44].mxu1 }
 0x1f0   :  { %v1622_v18 = vmax.f32 %v2247_v14, 0.0  ;;  %v2250_v19 = vadd.f32 %v1007_v16, %v4010_v5  ;;  %v1521_v20 = vpop.f32.mrb[44].mxu0  ;;  %v1009_v21 = vpop.f32.mrb[45].mxu1 }
 0x1f1   :  { %v1623_v23 = vmax.f32 %v2249_v15, 0.0  ;;  %v2252_v24 = vadd.f32 %v1009_v21, %v4012_v6  ;;  %v1523_v25 = vpop.f32.mrb[45].mxu0 }
 0x1f2   :  { %v2108_v26 = vpack.c.bf16 %v1622_v18, %v1620_v17  ;;  %v2251_v27 = vadd.f32 %v2250_v19, %v1521_v20 }
 0x1f3   :  { %v2106_v28 = vpack.c.bf16 %v1623_v23, %v1621_v22  ;;  %v2253_v29 = vadd.f32 %v2252_v24, %v1523_v25  ;;  %v1013_v30 = vpop.f32.mrb[46].mxu1 }
 0x1f4   :  { %v2254_v31 = vadd.f32 %v1013_v30, %v4010_v5  ;;  %v1527_v32 = vpop.f32.mrb[46].mxu0  ;;  %v1015_v33 = vpop.f32.mrb[47].mxu1  ;;  %v1624_v39 = vmax.f32 %v2251_v27, 0.0 }
 0x1f5   :  { %v2256_v34 = vadd.f32 %v1015_v33, %v4012_v6  ;;  %v1529_v35 = vpop.f32.mrb[47].mxu0  ;;  %2107 = vmatprep.subr.bf16.mxu0 %v2106_v28  ;;  %2140 = vmatprep.subr.bf16.mxu1 %v2106_v28  ;;  %v1625_v44 = vmax.f32 %v2253_v29, 0.0 }
 0x1f6   :  { %v2255_v36 = vadd.f32 %v2254_v31, %v1527_v32  ;;  %2109 = vmatpush1.bf16.xpose.msra.mxu0 %v2108_v26  ;;  %2156 = vmatpush1.bf16.xpose.msra.mxu1 %v2108_v26 }
 0x1f7   :  { %v2257_v37 = vadd.f32 %v2256_v34, %v1529_v35  ;;  %v1019_v38 = vpop.f32.mrb[48].mxu1 }
 0x1f8   :  { %v1626_v40 = vmax.f32 %v2255_v36, 0.0  ;;  %v2258_v41 = vadd.f32 %v1019_v38, %v4010_v5  ;;  %v1533_v42 = vpop.f32.mrb[48].mxu0  ;;  %v1021_v43 = vpop.f32.mrb[49].mxu1 }
 0x1f9   :  { %v1627_v45 = vmax.f32 %v2257_v37, 0.0  ;;  %v2260_v46 = vadd.f32 %v1021_v43, %v4012_v6  ;;  %v1535_v47 = vpop.f32.mrb[49].mxu0 }
 0x1fa   :  { %v2112_v48 = vpack.c.bf16 %v1626_v40, %v1624_v39  ;;  %v2259_v49 = vadd.f32 %v2258_v41, %v1533_v42 }
 0x1fb   :  { %v2110_v50 = vpack.c.bf16 %v1627_v45, %v1625_v44  ;;  %v2261_v51 = vadd.f32 %v2260_v46, %v1535_v47  ;;  %v1025_v52 = vpop.f32.mrb[50].mxu1 }
 0x1fc   :  { %v2262_v53 = vadd.f32 %v1025_v52, %v4010_v5  ;;  %v1539_v54 = vpop.f32.mrb[50].mxu0  ;;  %v1027_v55 = vpop.f32.mrb[51].mxu1  ;;  %v1628_v61 = vmax.f32 %v2259_v49, 0.0 }
 0x1fd   :  { %v2264_v56 = vadd.f32 %v1027_v55, %v4012_v6  ;;  %v1541_v57 = vpop.f32.mrb[51].mxu0  ;;  %2111 = vmatprep.subr.bf16.mxu0 %v2110_v50  ;;  %2141 = vmatprep.subr.bf16.mxu1 %v2110_v50  ;;  %v1629_v7 = vmax.f32 %v2261_v51, 0.0 }
 0x1fe   :  { %v2263_v58 = vadd.f32 %v2262_v53, %v1539_v54  ;;  %2113 = vmatpush1.bf16.xpose.msra.mxu0 %v2112_v48  ;;  %2157 = vmatpush1.bf16.xpose.msra.mxu1 %v2112_v48 }
 0x1ff   :  { %v2265_v59 = vadd.f32 %v2264_v56, %v1541_v57  ;;  %v1031_v60 = vpop.f32.mrb[52].mxu1 }
 0x200   :  { %v1630_v62 = vmax.f32 %v2263_v58, 0.0  ;;  %v2266_v63 = vadd.f32 %v1031_v60, %v4010_v5  ;;  %v1545_v3 = vpop.f32.mrb[52].mxu0  ;;  %v1033_v4 = vpop.f32.mrb[53].mxu1 }
 0x201   :  { %v1631_v8 = vmax.f32 %v2265_v59, 0.0  ;;  %v2268_v9 = vadd.f32 %v1033_v4, %v4012_v6  ;;  %v1547_v10 = vpop.f32.mrb[53].mxu0 }
 0x202   :  { %v2116_v11 = vpack.c.bf16 %v1630_v62, %v1628_v61  ;;  %v2267_v12 = vadd.f32 %v2266_v63, %v1545_v3 }
 0x203   :  { %v2114_v13 = vpack.c.bf16 %v1631_v8, %v1629_v7  ;;  %v2269_v14 = vadd.f32 %v2268_v9, %v1547_v10  ;;  %v1037_v15 = vpop.f32.mrb[54].mxu1 }
 0x204   :  { %v2270_v16 = vadd.f32 %v1037_v15, %v4010_v5  ;;  %v1551_v17 = vpop.f32.mrb[54].mxu0  ;;  %v1039_v18 = vpop.f32.mrb[55].mxu1  ;;  %v1632_v24 = vmax.f32 %v2267_v12, 0.0 }
 0x205   :  { %v2272_v19 = vadd.f32 %v1039_v18, %v4012_v6  ;;  %v1553_v20 = vpop.f32.mrb[55].mxu0  ;;  %2115 = vmatprep.subr.bf16.mxu0 %v2114_v13  ;;  %2142 = vmatprep.subr.bf16.mxu1 %v2114_v13  ;;  %v1633_v29 = vmax.f32 %v2269_v14, 0.0  ;;  %v1653_v14 = vpop.permute.xlu0 %1652 }
 0x206   :  { %v2271_v21 = vadd.f32 %v2270_v16, %v1551_v17  ;;  %2117 = vmatpush1.bf16.xpose.msra.mxu0 %v2116_v11  ;;  %2158 = vmatpush1.bf16.xpose.msra.mxu1 %v2116_v11  ;;  %v1746_v15 = vpop.permute.xlu1 %1745 }
 0x207   :  { %v2273_v22 = vadd.f32 %v2272_v19, %v1553_v20  ;;  %v1043_v23 = vpop.f32.mrb[56].mxu1 }
 0x208   :  { %v1634_v25 = vmax.f32 %v2271_v21, 0.0  ;;  %v2274_v26 = vadd.f32 %v1043_v23, %v4010_v5  ;;  %v1557_v27 = vpop.f32.mrb[56].mxu0  ;;  %v1045_v28 = vpop.f32.mrb[57].mxu1 }
 0x209   :  { %v1635_v30 = vmax.f32 %v2273_v22, 0.0  ;;  %v2276_v31 = vadd.f32 %v1045_v28, %v4012_v6  ;;  %v1559_v32 = vpop.f32.mrb[57].mxu0  ;;  %v1658_v16 = vpop.permute.xlu0 %1657 }
 0x20a   :  { %v2120_v33 = vpack.c.bf16 %v1634_v25, %v1632_v24  ;;  %v2275_v34 = vadd.f32 %v2274_v26, %v1557_v27 }
 0x20b   :  { %v2118_v35 = vpack.c.bf16 %v1635_v30, %v1633_v29  ;;  %v2277_v36 = vadd.f32 %v2276_v31, %v1559_v32  ;;  %v1049_v37 = vpop.f32.mrb[58].mxu1  ;;  %v1751_v29 = vpop.permute.xlu1 %1750 }
 0x20c   :  { %v2278_v38 = vadd.f32 %v1049_v37, %v4010_v5  ;;  %v1563_v39 = vpop.f32.mrb[58].mxu0  ;;  %v1051_v40 = vpop.f32.mrb[59].mxu1  ;;  %v1636_v46 = vmax.f32 %v2275_v34, 0.0 }
 0x20d   :  { %v2280_v41 = vadd.f32 %v1051_v40, %v4012_v6  ;;  %v1565_v42 = vpop.f32.mrb[59].mxu0  ;;  %2119 = vmatprep.subr.bf16.mxu0 %v2118_v35  ;;  %2143 = vmatprep.subr.bf16.mxu1 %v2118_v35  ;;  %v1637_v51 = vmax.f32 %v2277_v36, 0.0 }
 0x20e   :  { %v2279_v43 = vadd.f32 %v2278_v38, %v1563_v39  ;;  %2121 = vmatpush1.bf16.xpose.msra.mxu0 %v2120_v33  ;;  %2159 = vmatpush1.bf16.xpose.msra.mxu1 %v2120_v33 }
 0x20f   :  { %v2281_v44 = vadd.f32 %v2280_v41, %v1565_v42  ;;  %v1055_v45 = vpop.f32.mrb[60].mxu1  ;;  %v2423_v41 = vmov 1966171168  }
 0x210   :  { %v1638_v47 = vmax.f32 %v2279_v43, 0.0  ;;  %v2282_v48 = vadd.f32 %v1055_v45, %v4010_v5  ;;  %v1569_v49 = vpop.f32.mrb[60].mxu0  ;;  %v1057_v50 = vpop.f32.mrb[61].mxu1  ;;  %v1787_v42 = vunpack.c.l.s4 %v2423_v41 }
 0x211   :  { %v1639_v52 = vmax.f32 %v2281_v44, 0.0  ;;  %v2284_v53 = vadd.f32 %v1057_v50, %v4012_v6  ;;  %v1571_v54 = vpop.f32.mrb[61].mxu0 }
 0x212   :  { %v2124_v55 = vpack.c.bf16 %v1638_v47, %v1636_v46  ;;  %v2283_v56 = vadd.f32 %v2282_v48, %v1569_v49  ;;  %v1788_v48 = vunpack.c.0.s8 %v1787_v42 }
 0x213   :  { %v2122_v57 = vpack.c.bf16 %v1639_v52, %v1637_v51  ;;  %v2285_v58 = vadd.f32 %v2284_v53, %v1571_v54  ;;  %v1061_v59 = vpop.f32.mrb[62].mxu1 }
 0x214   :  { %v2286_v60 = vadd.f32 %v1061_v59, %v4010_v5  ;;  %v1575_v61 = vpop.f32.mrb[62].mxu0  ;;  %v1063_v62 = vpop.f32.mrb[63].mxu1  ;;  %v1640_v8 = vmax.f32 %v2283_v56, 0.0  ;;  %v1644_v5 = vld [vmem:[%s4115_s3] sm:$0xff]  ;;  %v1791_v54 = vsub.s32 %v1788_v48, %v4001_v1 }
 0x215   :  { %v2288_v63 = vadd.f32 %v1063_v62, %v4012_v6  ;;  %v1577_v3 = vpop.f32.mrb[63].mxu0  ;;  %2123 = vmatprep.subr.bf16.mxu0 %v2122_v57  ;;  %2144 = vmatprep.subr.bf16.mxu1 %v2122_v57  ;;  %v1641_v10 = vmax.f32 %v2285_v58, 0.0  ;;  %v1646_v6 = vld [vmem:[%s4115_s3 + $0x10] sm:$0xff] }
 0x216   :  { %v2287_v4 = vadd.f32 %v2286_v60, %v1575_v61  ;;  %2125 = vmatpush1.bf16.xpose.msra.mxu0 %v2124_v55  ;;  %2160 = vmatpush1.bf16.xpose.msra.mxu1 %v2124_v55 }
 0x217   :  { %v2289_v7 = vadd.f32 %v2288_v63, %v1577_v3 }
 0x218   :  { %v1642_v9 = vmax.f32 %v2287_v4, 0.0 }
 0x219   :  { %v1643_v11 = vmax.f32 %v2289_v7, 0.0 }
 0x21a   :  { %v2128_v12 = vpack.c.bf16 %v1642_v9, %v1640_v8 }
 0x21b   :  { %v2126_v13 = vpack.c.bf16 %v1643_v11, %v1641_v10 }
 0x21c   :  { %v1775_v45 = vpop.permute.xlu0 %1774 }
 0x21d   :  { %2127 = vmatprep.subr.bf16.mxu0 %v2126_v13  ;;  %2145 = vmatprep.subr.bf16.mxu1 %v2126_v13  ;;  %v1780_v50 = vrot.slane %v1775_v45, %v544_v2 }
 0x21e   :  { %2129 = vmatpush1.bf16.xpose.msra.mxu0 %v2128_v12  ;;  %2161 = vmatpush1.bf16.xpose.msra.mxu1 %v2128_v12 }
 0x225   :  { %1725 = vmatmul.mubr.f32.vlgmr.msra.gmra.mrb[64].mxu0 %v1644_v5  ;;  %1731 = vmatmul.mubr.f32.vlgmr.msra.gmra.mrb[64].mxu1 %v1646_v6 }
 0x2f8   :  { %v1726_v17 = vpop.f32.mrb[64].mxu0  ;;  %v1732_v18 = vpop.f32.mrb[64].mxu1 }
 0x2f9   :  { %v1727_v19 = vadd.f32 %v1726_v17, %v1653_v14  ;;  %v1733_v20 = vadd.f32 %v1732_v18, %v1658_v16  ;;  %v1728_v21 = vpop.f32.mrb[65].mxu0  ;;  %v1734_v22 = vpop.f32.mrb[65].mxu1 }
 0x2fa   :  { %v1729_v23 = vadd.f32 %v1728_v21, %v1653_v14  ;;  %v1735_v24 = vadd.f32 %v1734_v22, %v1658_v16 }
 0x2fb   :  { %v1737_v25 = vmax.f32 %v1727_v19, 0.0  ;;  %v1739_v26 = vmax.f32 %v1733_v20, 0.0 }
 0x2fc   :  { %v1738_v27 = vmax.f32 %v1729_v23, 0.0  ;;  %v1740_v28 = vmax.f32 %v1735_v24, 0.0 }
 0x2fd   :  { %v1753_v30 = vmul.f32 %v1746_v15, %v1737_v25  ;;  %v1755_v31 = vmul.f32 %v1751_v29, %v1739_v26 }
 0x2fe   :  { %v1754_v32 = vmul.f32 %v1746_v15, %v1738_v27  ;;  %v1756_v33 = vmul.f32 %v1751_v29, %v1740_v28 }
 0x2ff   :  { %v1757_v34 = vadd.f32 %v1755_v31, %v1753_v30 }
 0x300   :  { %v1764_v35 = vadd.f32 %v1756_v33, %v1754_v32 }
 0x301   :  { %v1758_v36 = vrot.slane %v1757_v34, 4 }
 0x302   :  { %v1765_v37 = vrot.slane %v1764_v35, 4 }
 0x303   :  { %v1759_v38 = vadd.f32 %v1758_v36, %v1757_v34 }
 0x304   :  { %v1766_v39 = vadd.f32 %v1765_v37, %v1764_v35 }
 0x305   :  { %v1760_v40 = vrot.slane %v1759_v38, 2 }
 0x306   :  { %v1767_v43 = vrot.slane %v1766_v39, 2 }
 0x307   :  { %v1761_v44 = vadd.f32 %v1760_v40, %v1759_v38 }
 0x308   :  { %v1768_v46 = vadd.f32 %v1767_v43, %v1766_v39 }
 0x309   :  { %v1762_v47 = vrot.slane %v1761_v44, 1 }
 0x30a   :  { %v1769_v49 = vrot.slane %v1768_v46, 1 }
 0x30b   :  { %v1763_v51 = vadd.f32 %v1762_v47, %v1761_v44 }
 0x30c   :  { %v1770_v52 = vadd.f32 %v1769_v49, %v1768_v46 }
 0x30d   :  { %v1781_v53 = vadd.f32 %v1780_v50, %v1763_v51 }
 0x30e   :  { %v1782_v55 = vadd.f32 %v1780_v50, %v1770_v52 }
 0x310   :  { %v1785_v56 = vcombine.low %v1781_v53, %v1782_v55 }
 0x312   :  { %v1792_v57 = vrot.slane %v1785_v56, %v1791_v54 }
 0x314   :  { %v1799_v58 = vrot.slane %v1792_v57, %v1791_v54 }
 0x316   :  { %1805 = vst.msk [vmem:[%s4119_s7] sm:$0x3] %vm1803_vm0, %v1799_v58 }

</bundles_post_ra>
